<compile_context>
chip_gen: v5e
topology: v5e:2x2
jax: 0.10.0
libtpu: 0.0.40
codegen_flags: <defaults>
</compile_context>

<pallas_src>
import functools

import jax
import jax.numpy as jnp
from jax import lax
from jax.experimental import pallas as pl
from jax.experimental.pallas import tpu as pltpu


# Explicit VMEM budgets so behaviour does not depend on per-generation scoped
# defaults (16 MiB on v5e, 32 MiB on v6e/v7x).  The attention budget is capped
# at v7x's 64 MiB physical per-TensorCore VMEM; lower tq_target for very long
# sequences / many heads.
_LINEAR_VMEM_LIMIT = 32 * 1024 * 1024
_ATTN_VMEM_LIMIT = 64 * 1024 * 1024


def _round_up(x, m):
    return ((x + m - 1) // m) * m


def _pick_tile(dim, target, multiples=(8,)):
    """Largest divisor of `dim` that is <= target and a multiple of one of
    `multiples` (tried in order).  Falls back to the full dim."""
    if dim <= target:
        return dim
    for mult in multiples:
        start = target - (target % mult)
        for cand in range(start, 0, -mult):
            if dim % cand == 0:
                return cand
    return dim


# ----------------------------------------------------------------------------
# Kernel 1: tiled fused linear layer  y = x @ W + b   (used for qkv and proj)
# ----------------------------------------------------------------------------
def _linear_kernel(x_ref, w_ref, b_ref, o_ref, acc_ref):
    # x_ref: (tm, tk), w_ref: (tk, tn), b_ref: (1, tn) f32,
    # o_ref: (tm, tn), acc_ref: (tm, tn) f32 scratch (persists across K steps).
    @pl.when(pl.program_id(2) == 0)
    def _init():
        acc_ref[...] = jnp.zeros_like(acc_ref)

    # Cast tiles to bf16 inside the kernel (hidden under the MXU) instead of a
    # wrapper-side fp32->bf16 pass over x / w in HBM; fp32 accumulation.
    acc_ref[...] += jnp.dot(
        x_ref[...].astype(jnp.bfloat16),
        w_ref[...].astype(jnp.bfloat16),
        preferred_element_type=jnp.float32,
    )

    @pl.when(pl.program_id(2) == pl.num_programs(2) - 1)
    def _finalize():
        o_ref[...] = (acc_ref[...] + b_ref[...]).astype(o_ref.dtype)


def linear(x, w, b, out_dtype=None, *, tm_target=512, tn_target=512,
           tk_target=512):
    """x: (M, K), w: (K, Nout), b: (Nout,) -> (M, Nout)."""
    M, K = x.shape
    Nout = w.shape[1]
    out_dtype = out_dtype or x.dtype

    b2 = b.astype(jnp.float32).reshape(1, Nout)

    # bf16 packs 16 rows per sublane group -> prefer tm % 16 == 0.
    tm = _pick_tile(M, tm_target, (16, 8))
    tn = _pick_tile(Nout, tn_target, (128,))
    tk = _pick_tile(K, tk_target, (128,))
    grid = (M // tm, Nout // tn, K // tk)

    cost = pl.CostEstimate(
        flops=2 * M * Nout * K,
        transcendentals=0,
        bytes_accessed=(x.size * x.dtype.itemsize
                        + w.size * w.dtype.itemsize
                        + M * Nout * jnp.dtype(out_dtype).itemsize),
    )

    return pl.pallas_call(
        _linear_kernel,
        out_shape=jax.ShapeDtypeStruct((M, Nout), out_dtype),
        grid_spec=pltpu.PrefetchScalarGridSpec(
            num_scalar_prefetch=0,
            grid=grid,
            in_specs=[
                pl.BlockSpec((tm, tk), lambda i, j, k: (i, k)),
                pl.BlockSpec((tk, tn), lambda i, j, k: (k, j)),
                pl.BlockSpec((1, tn), lambda i, j, k: (0, j)),
            ],
            out_specs=pl.BlockSpec((tm, tn), lambda i, j, k: (i, j)),
            scratch_shapes=[pltpu.VMEM((tm, tn), jnp.float32)],
        ),
        compiler_params=pltpu.CompilerParams(
            dimension_semantics=("parallel", "parallel", "arbitrary"),
            vmem_limit_bytes=_LINEAR_VMEM_LIMIT,
        ),
        cost_estimate=cost,
    )(x, w, b2)


# ----------------------------------------------------------------------------
# Kernel 2: multi-head scaled dot-product attention.
#   One grid step = one (batch, q-tile); all heads are processed inside the
#   step.  Output is written head-merged, i.e. directly in (B, N, C) layout,
#   and the attention map is written lane-dense as (B, H, tq, Np) tiles.
# ----------------------------------------------------------------------------
def _attention_kernel(q_ref, k_ref, v_ref, attn_ref, o_ref, *, scale, heads,
                      head_dim, kv_valid, kv_total):
    # q_ref: (1, tq, 1, H, hd); k_ref / v_ref: (1, Np, 1, H, hd)   (bf16)
    # attn_ref: (1, H, tq, Np); o_ref: (1, tq, H*hd)
    key_mask = None
    if kv_valid < kv_total:  # static: only when the sequence length was padded
        key_mask = lax.broadcasted_iota(jnp.int32, (1, kv_total), 1) < kv_valid

    for h in range(heads):  # static unroll; each dot stays 2-D (MXU native)
        # Slice heads directly on the refs (strided VMEM loads) instead of
        # materializing (N, H, hd) values and re-slicing them per head.
        q_h = q_ref[0, :, 0, h, :] * scale      # scale folded into q once
        k_h = k_ref[0, :, 0, h, :]              # (Np, hd)
        v_h = v_ref[0, :, 0, h, :]              # (Np, hd)

        # (tq, Np) fp32 scores: contract hd directly (no materialized k.T).
        s = lax.dot_general(
            q_h, k_h,
            dimension_numbers=(((1,), (1,)), ((), ())),
            preferred_element_type=jnp.float32,
        )

        if key_mask is not None:
            s = jnp.where(key_mask, s, -1e30)

        # Softmax in fp32 with exact normalization (attn is a module output,
        # rows must sum to 1 like torch.softmax).
        m = jnp.max(s, axis=-1, keepdims=True)
        e = jnp.exp(s - m)
        inv = 1.0 / jnp.sum(e, axis=-1, keepdims=True)
        p = e * inv

        p_lo = p.astype(v_h.dtype)              # single low-precision cast
        if attn_ref.dtype == v_h.dtype:
            attn_ref[0, h] = p_lo
        else:
            attn_ref[0, h] = p.astype(attn_ref.dtype)

        # (tq, hd) head output written into its channel slice of the
        # head-merged (tq, C) block.
        o_h = jnp.dot(p_lo, v_h, preferred_element_type=jnp.float32)
        o_ref[0, :, h * head_dim:(h + 1) * head_dim] = o_h.astype(o_ref.dtype)


def multihead_attention_core(qkv, B, N, heads, head_dim, scale, *,
                             attn_dtype=jnp.bfloat16,
                             out_dtype=jnp.bfloat16,
                             tq_target=128):
    """qkv: (B*N, 3*C) projection output.

    Returns out (B, N, C) head-merged and attn (B, heads, N, N).
    """
    C = heads * head_dim
    # Contiguous reshape only (no HBM transpose); matches torch's
    # reshape(B, N, 3, heads, head_dim) column ordering.
    qkv5 = qkv.reshape(B, N, 3, heads, head_dim)

    # q-tile / padded sequence length: tq is a multiple of 8 and divides Np,
    # so VMEM stays bounded even for ViT-like N (197, 577, ...).
    tq = min(_round_up(tq_target, 8), _round_up(N, 8))
    Np = _round_up(N, tq)
    if Np != N:
        # One extra HBM pass over qkv, only for awkward sequence lengths.
        qkv5 = jnp.pad(qkv5, ((0, 0), (0, Np - N), (0, 0), (0, 0), (0, 0)))

    grid = (B, Np // tq)
    kernel = functools.partial(_attention_kernel, scale=scale, heads=heads,
                               head_dim=head_dim, kv_valid=N, kv_total=Np)

    # Same array passed three times; the 3-axis index in each index_map picks
    # the q / k / v slab.  K/V block indices do not depend on the q-tile index,
    # so the pipeline keeps them resident across the inner grid axis.
    q_spec = pl.BlockSpec((1, tq, 1, heads, head_dim),
                          lambda b, qi: (b, qi, 0, 0, 0))
    k_spec = pl.BlockSpec((1, Np, 1, heads, head_dim),
                          lambda b, qi: (b, 0, 1, 0, 0))
    v_spec = pl.BlockSpec((1, Np, 1, heads, head_dim),
                          lambda b, qi: (b, 0, 2, 0, 0))

    itemsize = qkv5.dtype.itemsize
    cost = pl.CostEstimate(
        flops=4 * B * heads * Np * Np * head_dim,
        transcendentals=B * heads * Np * Np,
        bytes_accessed=(3 * B * Np * C * itemsize
                        + B * heads * Np * Np * jnp.dtype(attn_dtype).itemsize
                        + B * Np * C * jnp.dtype(out_dtype).itemsize),
    )

    attn, out = pl.pallas_call(
        kernel,
        out_shape=(
            jax.ShapeDtypeStruct((B, heads, Np, Np), attn_dtype),
            jax.ShapeDtypeStruct((B, Np, C), out_dtype),
        ),
        grid=grid,
        in_specs=[q_spec, k_spec, v_spec],
        out_specs=(
            pl.BlockSpec((1, heads, tq, Np), lambda b, qi: (b, 0, qi, 0)),
            pl.BlockSpec((1, tq, C), lambda b, qi: (b, qi, 0)),
        ),
        compiler_params=pltpu.CompilerParams(
            dimension_semantics=("parallel", "parallel"),
            vmem_limit_bytes=_ATTN_VMEM_LIMIT,
        ),
        cost_estimate=cost,
    )(qkv5, qkv5, qkv5)

    if Np != N:
        attn = attn[:, :, :N, :N]
        out = out[:, :N, :]
    return out, attn


# ----------------------------------------------------------------------------
# Full module forward
# ----------------------------------------------------------------------------
def attention_forward(x, params, heads, attn_dtype=jnp.bfloat16):
    """x: (B, N, C). Returns (out (B, N, C), attn (B, heads, N, N))."""
    B, N, C = x.shape
    hd = C // heads
    scale = hd ** (-0.5)

    # qkv projection — bf16 output halves HBM traffic between the two kernels
    # (fp32 accumulation inside the kernel).
    qkv = linear(x.reshape(B * N, C), params["w_qkv"], params["b_qkv"],
                 out_dtype=jnp.bfloat16)  # (B*N, 3C)

    # Attention core: output already head-merged in (B, N, C) layout, so no
    # wrapper-side transpose is needed before the projection.
    out, attn = multihead_attention_core(qkv, B, N, heads, hd, scale,
                                         attn_dtype=attn_dtype)

    # Output projection back to the input dtype.
    out = linear(out.reshape(B * N, C), params["w_proj"], params["b_proj"],
                 out_dtype=x.dtype).reshape(B, N, C)

    # attn_drop / proj_drop are identity in inference mode.
    return out, attn


def init_params(key, dim):
    k1, k2, k3, k4 = jax.random.split(key, 4)
    scale = dim ** (-0.5)
    # Weights pre-cast to bf16 once (inference); biases stay fp32.
    return {
        "w_qkv": (jax.random.normal(k1, (dim, 3 * dim), jnp.float32)
                  * scale).astype(jnp.bfloat16),
        "b_qkv": jax.random.normal(k2, (3 * dim,), jnp.float32) * 0.02,
        "w_proj": (jax.random.normal(k3, (dim, dim), jnp.float32)
                   * scale).astype(jnp.bfloat16),
        "b_proj": jax.random.normal(k4, (dim,), jnp.float32) * 0.02,
    }


# Pure-JAX reference (fp32) of the PyTorch module, for a correctness check.
def reference_forward(x, params, heads):
    B, N, C = x.shape
    hd = C // heads
    scale = hd ** (-0.5)
    w_qkv = params["w_qkv"].astype(jnp.float32)
    w_proj = params["w_proj"].astype(jnp.float32)
    qkv = jnp.dot(x, w_qkv, precision=lax.Precision.HIGHEST) + params["b_qkv"]
    qkv = qkv.reshape(B, N, 3, heads, hd).transpose(2, 0, 3, 1, 4)
    q, k, v = qkv[0], qkv[1], qkv[2]
    s = jnp.einsum("bhid,bhjd->bhij", q, k,
                   precision=lax.Precision.HIGHEST) * scale
    attn = jax.nn.softmax(s, axis=-1)
    o = jnp.einsum("bhij,bhjd->bhid", attn, v,
                   precision=lax.Precision.HIGHEST)
    o = o.transpose(0, 2, 1, 3).reshape(B, N, C)
    out = jnp.dot(o, w_proj, precision=lax.Precision.HIGHEST) + params["b_proj"]
    return out, attn


if __name__ == "__main__":
    B, N, C, heads = 2, 8, 32, 4

    key = jax.random.PRNGKey(0)
    kx, kp = jax.random.split(key)
    x = jax.random.normal(kx, (B, N, C), jnp.float32)
    params = init_params(kp, C)

    fwd = jax.jit(functools.partial(attention_forward, heads=heads))
    out, attn = fwd(x, params)
    jax.block_until_ready((out, attn))

    assert out.shape == (B, N, C)
    assert attn.shape == (B, heads, N, N)
    assert out.dtype == x.dtype

    # Numerical check against the fp32 reference (bf16 intermediates -> loose
    # but bug-catching tolerances).
    out_exp, attn_exp = reference_forward(x, params, heads)
    out_err = float(jnp.max(jnp.abs(out - out_exp)))
    attn_err = float(jnp.max(jnp.abs(attn.astype(jnp.float32) - attn_exp)))
    assert out_err < 0.15, f"out mismatch: max abs err {out_err}"
    assert attn_err < 0.05, f"attn mismatch: max abs err {attn_err}"

    print("KERNEL_OK")
</pallas_src>

<mosaic_0001>
module attributes {stable_mosaic.version = 11 : i64} {
  func.func @_linear_kernel(%arg0: i32, %arg1: i32, %arg2: i32, %arg3: memref<16x32xbf16, #tpu.memory_space<vmem>>, %arg4: memref<32x32xbf16, #tpu.memory_space<vmem>>, %arg5: memref<1x32xf32, #tpu.memory_space<vmem>>, %arg6: memref<16x32xf32, #tpu.memory_space<vmem>>, %arg7: memref<16x32xf32, #tpu.memory_space<vmem>>) attributes {dimension_semantics = [#tpu.dimension_semantics<parallel>, #tpu.dimension_semantics<parallel>, #tpu.dimension_semantics<arbitrary>], iteration_bounds = array<i64: 1, 1, 1>, scalar_prefetch = 0 : i64, scratch_operands = 1 : i64, tpu.core_type = #tpu.core_type<tc>, window_params = [{transform_indices = @transform_0, window_bounds = array<i64: 16, 32>}, {transform_indices = @transform_1, window_bounds = array<i64: 32, 32>}, {transform_indices = @transform_2, window_bounds = array<i64: 1, 32>}, {transform_indices = @transform_3, window_bounds = array<i64: 16, 32>}]} {
    %c0_i32 = arith.constant 0 : i32
    %0 = arith.cmpi eq, %arg2, %c0_i32 : i32
    %1 = arith.extui %0 : i1 to i32
    %c0_i32_0 = arith.constant 0 : i32
    %2 = arith.cmpi ne, %1, %c0_i32_0 : i32
    scf.if %2 {
      %cst_10 = arith.constant 0.000000e+00 : f32
      %12 = vector.broadcast %cst_10 : f32 to vector<16x32xf32>
      %c0_11 = arith.constant 0 : index
      %c0_12 = arith.constant 0 : index
      %13 = vector.load %arg7[%c0_11, %c0_12] : memref<16x32xf32, #tpu.memory_space<vmem>>, vector<16x32xf32>
      tpu.vector_store %arg7[%c0_11, %c0_12], %12 {strides = array<i32>} : memref<16x32xf32, #tpu.memory_space<vmem>>, vector<16x32xf32>,
    } else {
    }
    %c0 = arith.constant 0 : index
    %c0_1 = arith.constant 0 : index
    %3 = vector.load %arg7[%c0, %c0_1] : memref<16x32xf32, #tpu.memory_space<vmem>>, vector<16x32xf32>
    %c0_2 = arith.constant 0 : index
    %c0_3 = arith.constant 0 : index
    %4 = vector.load %arg3[%c0_2, %c0_3] : memref<16x32xbf16, #tpu.memory_space<vmem>>, vector<16x32xbf16>
    %c0_4 = arith.constant 0 : index
    %c0_5 = arith.constant 0 : index
    %5 = vector.load %arg4[%c0_4, %c0_5] : memref<32x32xbf16, #tpu.memory_space<vmem>>, vector<32x32xbf16>
    %cst = arith.constant dense<0.000000e+00> : vector<16x32xf32>
    %6 = tpu.matmul %4, %5, %cst {dimension_numbers = #tpu.dot_dimension_numbers<[1], [0], [0], [1], [0, 0, 1, 1], [], []>} : vector<16x32xbf16>, vector<32x32xbf16>, vector<16x32xf32> -> vector<16x32xf32>
    %7 = arith.addf %3, %6 : vector<16x32xf32>
    %c0_6 = arith.constant 0 : index
    %c0_7 = arith.constant 0 : index
    %8 = vector.load %arg7[%c0_6, %c0_7] : memref<16x32xf32, #tpu.memory_space<vmem>>, vector<16x32xf32>
    tpu.vector_store %arg7[%c0_6, %c0_7], %7 {strides = array<i32>} : memref<16x32xf32, #tpu.memory_space<vmem>>, vector<16x32xf32>,
    %c0_i32_8 = arith.constant 0 : i32
    %9 = arith.cmpi eq, %arg2, %c0_i32_8 : i32
    %10 = arith.extui %9 : i1 to i32
    %c0_i32_9 = arith.constant 0 : i32
    %11 = arith.cmpi ne, %10, %c0_i32_9 : i32
    scf.if %11 {
      %c0_10 = arith.constant 0 : index
      %c0_11 = arith.constant 0 : index
      %12 = vector.load %arg7[%c0_10, %c0_11] : memref<16x32xf32, #tpu.memory_space<vmem>>, vector<16x32xf32>
      %c0_12 = arith.constant 0 : index
      %c0_13 = arith.constant 0 : index
      %13 = vector.load %arg5[%c0_12, %c0_13] : memref<1x32xf32, #tpu.memory_space<vmem>>, vector<1x32xf32>
      %14 = vector.broadcast %13 : vector<1x32xf32> to vector<16x32xf32>
      %15 = arith.addf %12, %14 : vector<16x32xf32>
      %c0_14 = arith.constant 0 : index
      %c0_15 = arith.constant 0 : index
      %16 = vector.load %arg6[%c0_14, %c0_15] : memref<16x32xf32, #tpu.memory_space<vmem>>, vector<16x32xf32>
      tpu.vector_store %arg6[%c0_14, %c0_15], %15 {strides = array<i32>} : memref<16x32xf32, #tpu.memory_space<vmem>>, vector<16x32xf32>,
    } else {
    }
    return
  }
  func.func @transform_0(%arg0: i32, %arg1: i32, %arg2: i32) -> (i32, i32) {
    %c0_i32 = arith.constant 0 : i32
    return %arg0, %arg2 : i32, i32
  }
  func.func @transform_1(%arg0: i32, %arg1: i32, %arg2: i32) -> (i32, i32) {
    %c0_i32 = arith.constant 0 : i32
    return %arg2, %arg1 : i32, i32
  }
  func.func @transform_2(%arg0: i32, %arg1: i32, %arg2: i32) -> (i32, i32) {
    %c0_i32 = arith.constant 0 : i32
    %c0_i32_0 = arith.constant 0 : i32
    return %c0_i32, %arg1 : i32, i32
  }
  func.func @transform_3(%arg0: i32, %arg1: i32, %arg2: i32) -> (i32, i32) {
    %c0_i32 = arith.constant 0 : i32
    return %arg0, %arg1 : i32, i32
  }
}

module attributes {stable_mosaic.version = 11 : i64} {
  func.func @_linear_kernel(%arg0: i32, %arg1: i32, %arg2: i32, %arg3: memref<16x32xf32, #tpu.memory_space<vmem>>, %arg4: memref<32x96xbf16, #tpu.memory_space<vmem>>, %arg5: memref<1x96xf32, #tpu.memory_space<vmem>>, %arg6: memref<16x96xbf16, #tpu.memory_space<vmem>>, %arg7: memref<16x96xf32, #tpu.memory_space<vmem>>) attributes {dimension_semantics = [#tpu.dimension_semantics<parallel>, #tpu.dimension_semantics<parallel>, #tpu.dimension_semantics<arbitrary>], iteration_bounds = array<i64: 1, 1, 1>, scalar_prefetch = 0 : i64, scratch_operands = 1 : i64, tpu.core_type = #tpu.core_type<tc>, window_params = [{transform_indices = @transform_0, window_bounds = array<i64: 16, 32>}, {transform_indices = @transform_1, window_bounds = array<i64: 32, 96>}, {transform_indices = @transform_2, window_bounds = array<i64: 1, 96>}, {transform_indices = @transform_3, window_bounds = array<i64: 16, 96>}]} {
    %c0_i32 = arith.constant 0 : i32
    %0 = arith.cmpi eq, %arg2, %c0_i32 : i32
    %1 = arith.extui %0 : i1 to i32
    %c0_i32_0 = arith.constant 0 : i32
    %2 = arith.cmpi ne, %1, %c0_i32_0 : i32
    scf.if %2 {
      %cst_10 = arith.constant 0.000000e+00 : f32
      %13 = vector.broadcast %cst_10 : f32 to vector<16x96xf32>
      %c0_11 = arith.constant 0 : index
      %c0_12 = arith.constant 0 : index
      %14 = vector.load %arg7[%c0_11, %c0_12] : memref<16x96xf32, #tpu.memory_space<vmem>>, vector<16x96xf32>
      tpu.vector_store %arg7[%c0_11, %c0_12], %13 {strides = array<i32>} : memref<16x96xf32, #tpu.memory_space<vmem>>, vector<16x96xf32>,
    } else {
    }
    %c0 = arith.constant 0 : index
    %c0_1 = arith.constant 0 : index
    %3 = vector.load %arg7[%c0, %c0_1] : memref<16x96xf32, #tpu.memory_space<vmem>>, vector<16x96xf32>
    %c0_2 = arith.constant 0 : index
    %c0_3 = arith.constant 0 : index
    %4 = vector.load %arg3[%c0_2, %c0_3] : memref<16x32xf32, #tpu.memory_space<vmem>>, vector<16x32xf32>
    %5 = arith.truncf %4 : vector<16x32xf32> to vector<16x32xbf16>
    %c0_4 = arith.constant 0 : index
    %c0_5 = arith.constant 0 : index
    %6 = vector.load %arg4[%c0_4, %c0_5] : memref<32x96xbf16, #tpu.memory_space<vmem>>, vector<32x96xbf16>
    %cst = arith.constant dense<0.000000e+00> : vector<16x96xf32>
    %7 = tpu.matmul %5, %6, %cst {dimension_numbers = #tpu.dot_dimension_numbers<[1], [0], [0], [1], [0, 0, 1, 1], [], []>} : vector<16x32xbf16>, vector<32x96xbf16>, vector<16x96xf32> -> vector<16x96xf32>
    %8 = arith.addf %3, %7 : vector<16x96xf32>
    %c0_6 = arith.constant 0 : index
    %c0_7 = arith.constant 0 : index
    %9 = vector.load %arg7[%c0_6, %c0_7] : memref<16x96xf32, #tpu.memory_space<vmem>>, vector<16x96xf32>
    tpu.vector_store %arg7[%c0_6, %c0_7], %8 {strides = array<i32>} : memref<16x96xf32, #tpu.memory_space<vmem>>, vector<16x96xf32>,
    %c0_i32_8 = arith.constant 0 : i32
    %10 = arith.cmpi eq, %arg2, %c0_i32_8 : i32
    %11 = arith.extui %10 : i1 to i32
    %c0_i32_9 = arith.constant 0 : i32
    %12 = arith.cmpi ne, %11, %c0_i32_9 : i32
    scf.if %12 {
      %c0_10 = arith.constant 0 : index
      %c0_11 = arith.constant 0 : index
      %13 = vector.load %arg7[%c0_10, %c0_11] : memref<16x96xf32, #tpu.memory_space<vmem>>, vector<16x96xf32>
      %c0_12 = arith.constant 0 : index
      %c0_13 = arith.constant 0 : index
      %14 = vector.load %arg5[%c0_12, %c0_13] : memref<1x96xf32, #tpu.memory_space<vmem>>, vector<1x96xf32>
      %15 = vector.broadcast %14 : vector<1x96xf32> to vector<16x96xf32>
      %16 = arith.addf %13, %15 : vector<16x96xf32>
      %17 = arith.truncf %16 : vector<16x96xf32> to vector<16x96xbf16>
      %c0_14 = arith.constant 0 : index
      %c0_15 = arith.constant 0 : index
      %18 = vector.load %arg6[%c0_14, %c0_15] : memref<16x96xbf16, #tpu.memory_space<vmem>>, vector<16x96xbf16>
      tpu.vector_store %arg6[%c0_14, %c0_15], %17 {strides = array<i32>} : memref<16x96xbf16, #tpu.memory_space<vmem>>, vector<16x96xbf16>,
    } else {
    }
    return
  }
  func.func @transform_0(%arg0: i32, %arg1: i32, %arg2: i32) -> (i32, i32) {
    %c0_i32 = arith.constant 0 : i32
    return %arg0, %arg2 : i32, i32
  }
  func.func @transform_1(%arg0: i32, %arg1: i32, %arg2: i32) -> (i32, i32) {
    %c0_i32 = arith.constant 0 : i32
    return %arg2, %arg1 : i32, i32
  }
  func.func @transform_2(%arg0: i32, %arg1: i32, %arg2: i32) -> (i32, i32) {
    %c0_i32 = arith.constant 0 : i32
    %c0_i32_0 = arith.constant 0 : i32
    return %c0_i32, %arg1 : i32, i32
  }
  func.func @transform_3(%arg0: i32, %arg1: i32, %arg2: i32) -> (i32, i32) {
    %c0_i32 = arith.constant 0 : i32
    return %arg0, %arg1 : i32, i32
  }
}

module attributes {stable_mosaic.version = 11 : i64} {
  func.func @_attention_kernel(%arg0: i32, %arg1: i32, %arg2: memref<1x8x1x4x8xbf16, #tpu.memory_space<vmem>>, %arg3: memref<1x8x1x4x8xbf16, #tpu.memory_space<vmem>>, %arg4: memref<1x8x1x4x8xbf16, #tpu.memory_space<vmem>>, %arg5: memref<1x4x8x8xbf16, #tpu.memory_space<vmem>>, %arg6: memref<1x8x32xbf16, #tpu.memory_space<vmem>>) attributes {dimension_semantics = [#tpu.dimension_semantics<parallel>, #tpu.dimension_semantics<parallel>], iteration_bounds = array<i64: 2, 1>, scalar_prefetch = 0 : i64, scratch_operands = 0 : i64, tpu.core_type = #tpu.core_type<tc>, window_params = [{transform_indices = @transform_0, window_bounds = array<i64: 1, 8, 1, 4, 8>}, {transform_indices = @transform_1, window_bounds = array<i64: 1, 8, 1, 4, 8>}, {transform_indices = @transform_2, window_bounds = array<i64: 1, 8, 1, 4, 8>}, {transform_indices = @transform_3, window_bounds = array<i64: 1, 4, 8, 8>}, {transform_indices = @transform_4, window_bounds = array<i64: 1, 8, 32>}]} {
    %c0 = arith.constant 0 : index
    %c0_0 = arith.constant 0 : index
    %c0_1 = arith.constant 0 : index
    %c0_2 = arith.constant 0 : index
    %c0_3 = arith.constant 0 : index
    %0 = vector.load %arg2[%c0, %c0_0, %c0_1, %c0_2, %c0_3] : memref<1x8x1x4x8xbf16, #tpu.memory_space<vmem>>, vector<1x8x1x1x8xbf16>
    %1 = vector.shape_cast %0 : vector<1x8x1x1x8xbf16> to vector<8x8xbf16>
    %cst = arith.constant 3.535160e-01 : bf16
    %2 = vector.broadcast %cst : bf16 to vector<8x8xbf16>
    %3 = arith.mulf %1, %2 : vector<8x8xbf16>
    %c0_4 = arith.constant 0 : index
    %c0_5 = arith.constant 0 : index
    %c0_6 = arith.constant 0 : index
    %c0_7 = arith.constant 0 : index
    %c0_8 = arith.constant 0 : index
    %4 = vector.load %arg3[%c0_4, %c0_5, %c0_6, %c0_7, %c0_8] : memref<1x8x1x4x8xbf16, #tpu.memory_space<vmem>>, vector<1x8x1x1x8xbf16>
    %5 = vector.shape_cast %4 : vector<1x8x1x1x8xbf16> to vector<8x8xbf16>
    %c0_9 = arith.constant 0 : index
    %c0_10 = arith.constant 0 : index
    %c0_11 = arith.constant 0 : index
    %c0_12 = arith.constant 0 : index
    %c0_13 = arith.constant 0 : index
    %6 = vector.load %arg4[%c0_9, %c0_10, %c0_11, %c0_12, %c0_13] : memref<1x8x1x4x8xbf16, #tpu.memory_space<vmem>>, vector<1x8x1x1x8xbf16>
    %7 = vector.shape_cast %6 : vector<1x8x1x1x8xbf16> to vector<8x8xbf16>
    %cst_14 = arith.constant dense<0.000000e+00> : vector<8x8xf32>
    %8 = tpu.matmul %3, %5, %cst_14 {dimension_numbers = #tpu.dot_dimension_numbers<[1], [1], [0], [0], [0, 0, 1, 0], [], []>} : vector<8x8xbf16>, vector<8x8xbf16>, vector<8x8xf32> -> vector<8x8xf32>
    %cst_15 = arith.constant dense<0xFF800000> : vector<8xf32>
    %9 = vector.multi_reduction <maximumf>, %8, %cst_15 [1] : vector<8x8xf32> to vector<8xf32>
    %10 = vector.shape_cast %9 : vector<8xf32> to vector<8x1xf32>
    %11 = vector.broadcast %10 : vector<8x1xf32> to vector<8x8xf32>
    %12 = arith.subf %8, %11 : vector<8x8xf32>
    %13 = math.exp %12 : vector<8x8xf32>
    %cst_16 = arith.constant dense<0.000000e+00> : vector<8xf32>
    %14 = vector.multi_reduction <add>, %13, %cst_16 [1] : vector<8x8xf32> to vector<8xf32>
    %15 = vector.shape_cast %14 : vector<8xf32> to vector<8x1xf32>
    %cst_17 = arith.constant 1.000000e+00 : f32
    %16 = vector.broadcast %cst_17 : f32 to vector<8x1xf32>
    %17 = arith.divf %16, %15 : vector<8x1xf32>
    %18 = vector.broadcast %17 : vector<8x1xf32> to vector<8x8xf32>
    %19 = arith.mulf %13, %18 : vector<8x8xf32>
    %20 = arith.truncf %19 : vector<8x8xf32> to vector<8x8xbf16>
    %c0_18 = arith.constant 0 : index
    %c0_19 = arith.constant 0 : index
    %c0_20 = arith.constant 0 : index
    %c0_21 = arith.constant 0 : index
    %21 = vector.load %arg5[%c0_18, %c0_19, %c0_20, %c0_21] : memref<1x4x8x8xbf16, #tpu.memory_space<vmem>>, vector<1x1x8x8xbf16>
    %22 = vector.shape_cast %21 : vector<1x1x8x8xbf16> to vector<8x8xbf16>
    %23 = vector.shape_cast %20 : vector<8x8xbf16> to vector<1x1x8x8xbf16>
    tpu.vector_store %arg5[%c0_18, %c0_19, %c0_20, %c0_21], %23 {strides = array<i32>} : memref<1x4x8x8xbf16, #tpu.memory_space<vmem>>, vector<1x1x8x8xbf16>,
    %cst_22 = arith.constant dense<0.000000e+00> : vector<8x8xf32>
    %24 = tpu.matmul %20, %7, %cst_22 {dimension_numbers = #tpu.dot_dimension_numbers<[1], [0], [0], [1], [0, 0, 1, 1], [], []>} : vector<8x8xbf16>, vector<8x8xbf16>, vector<8x8xf32> -> vector<8x8xf32>
    %25 = arith.truncf %24 : vector<8x8xf32> to vector<8x8xbf16>
    %c0_23 = arith.constant 0 : index
    %c0_24 = arith.constant 0 : index
    %c0_25 = arith.constant 0 : index
    %26 = vector.load %arg6[%c0_23, %c0_24, %c0_25] : memref<1x8x32xbf16, #tpu.memory_space<vmem>>, vector<1x8x8xbf16>
    %27 = vector.shape_cast %26 : vector<1x8x8xbf16> to vector<8x8xbf16>
    %28 = vector.shape_cast %25 : vector<8x8xbf16> to vector<1x8x8xbf16>
    tpu.vector_store %arg6[%c0_23, %c0_24, %c0_25], %28 {strides = array<i32>} : memref<1x8x32xbf16, #tpu.memory_space<vmem>>, vector<1x8x8xbf16>,
    %c0_26 = arith.constant 0 : index
    %c0_27 = arith.constant 0 : index
    %c0_28 = arith.constant 0 : index
    %c1 = arith.constant 1 : index
    %c0_29 = arith.constant 0 : index
    %29 = vector.load %arg2[%c0_26, %c0_27, %c0_28, %c1, %c0_29] : memref<1x8x1x4x8xbf16, #tpu.memory_space<vmem>>, vector<1x8x1x1x8xbf16>
    %30 = vector.shape_cast %29 : vector<1x8x1x1x8xbf16> to vector<8x8xbf16>
    %cst_30 = arith.constant 3.535160e-01 : bf16
    %31 = vector.broadcast %cst_30 : bf16 to vector<8x8xbf16>
    %32 = arith.mulf %30, %31 : vector<8x8xbf16>
    %c0_31 = arith.constant 0 : index
    %c0_32 = arith.constant 0 : index
    %c0_33 = arith.constant 0 : index
    %c1_34 = arith.constant 1 : index
    %c0_35 = arith.constant 0 : index
    %33 = vector.load %arg3[%c0_31, %c0_32, %c0_33, %c1_34, %c0_35] : memref<1x8x1x4x8xbf16, #tpu.memory_space<vmem>>, vector<1x8x1x1x8xbf16>
    %34 = vector.shape_cast %33 : vector<1x8x1x1x8xbf16> to vector<8x8xbf16>
    %c0_36 = arith.constant 0 : index
    %c0_37 = arith.constant 0 : index
    %c0_38 = arith.constant 0 : index
    %c1_39 = arith.constant 1 : index
    %c0_40 = arith.constant 0 : index
    %35 = vector.load %arg4[%c0_36, %c0_37, %c0_38, %c1_39, %c0_40] : memref<1x8x1x4x8xbf16, #tpu.memory_space<vmem>>, vector<1x8x1x1x8xbf16>
    %36 = vector.shape_cast %35 : vector<1x8x1x1x8xbf16> to vector<8x8xbf16>
    %cst_41 = arith.constant dense<0.000000e+00> : vector<8x8xf32>
    %37 = tpu.matmul %32, %34, %cst_41 {dimension_numbers = #tpu.dot_dimension_numbers<[1], [1], [0], [0], [0, 0, 1, 0], [], []>} : vector<8x8xbf16>, vector<8x8xbf16>, vector<8x8xf32> -> vector<8x8xf32>
    %cst_42 = arith.constant dense<0xFF800000> : vector<8xf32>
    %38 = vector.multi_reduction <maximumf>, %37, %cst_42 [1] : vector<8x8xf32> to vector<8xf32>
    %39 = vector.shape_cast %38 : vector<8xf32> to vector<8x1xf32>
    %40 = vector.broadcast %39 : vector<8x1xf32> to vector<8x8xf32>
    %41 = arith.subf %37, %40 : vector<8x8xf32>
    %42 = math.exp %41 : vector<8x8xf32>
    %cst_43 = arith.constant dense<0.000000e+00> : vector<8xf32>
    %43 = vector.multi_reduction <add>, %42, %cst_43 [1] : vector<8x8xf32> to vector<8xf32>
    %44 = vector.shape_cast %43 : vector<8xf32> to vector<8x1xf32>
    %cst_44 = arith.constant 1.000000e+00 : f32
    %45 = vector.broadcast %cst_44 : f32 to vector<8x1xf32>
    %46 = arith.divf %45, %44 : vector<8x1xf32>
    %47 = vector.broadcast %46 : vector<8x1xf32> to vector<8x8xf32>
    %48 = arith.mulf %42, %47 : vector<8x8xf32>
    %49 = arith.truncf %48 : vector<8x8xf32> to vector<8x8xbf16>
    %c0_45 = arith.constant 0 : index
    %c1_46 = arith.constant 1 : index
    %c0_47 = arith.constant 0 : index
    %c0_48 = arith.constant 0 : index
    %50 = vector.load %arg5[%c0_45, %c1_46, %c0_47, %c0_48] : memref<1x4x8x8xbf16, #tpu.memory_space<vmem>>, vector<1x1x8x8xbf16>
    %51 = vector.shape_cast %50 : vector<1x1x8x8xbf16> to vector<8x8xbf16>
    %52 = vector.shape_cast %49 : vector<8x8xbf16> to vector<1x1x8x8xbf16>
    tpu.vector_store %arg5[%c0_45, %c1_46, %c0_47, %c0_48], %52 {strides = array<i32>} : memref<1x4x8x8xbf16, #tpu.memory_space<vmem>>, vector<1x1x8x8xbf16>,
    %cst_49 = arith.constant dense<0.000000e+00> : vector<8x8xf32>
    %53 = tpu.matmul %49, %36, %cst_49 {dimension_numbers = #tpu.dot_dimension_numbers<[1], [0], [0], [1], [0, 0, 1, 1], [], []>} : vector<8x8xbf16>, vector<8x8xbf16>, vector<8x8xf32> -> vector<8x8xf32>
    %54 = arith.truncf %53 : vector<8x8xf32> to vector<8x8xbf16>
    %c0_50 = arith.constant 0 : index
    %c0_51 = arith.constant 0 : index
    %c8 = arith.constant 8 : index
    %55 = vector.load %arg6[%c0_50, %c0_51, %c8] : memref<1x8x32xbf16, #tpu.memory_space<vmem>>, vector<1x8x8xbf16>
    %56 = vector.shape_cast %55 : vector<1x8x8xbf16> to vector<8x8xbf16>
    %57 = vector.shape_cast %54 : vector<8x8xbf16> to vector<1x8x8xbf16>
    tpu.vector_store %arg6[%c0_50, %c0_51, %c8], %57 {strides = array<i32>} : memref<1x8x32xbf16, #tpu.memory_space<vmem>>, vector<1x8x8xbf16>,
    %c0_52 = arith.constant 0 : index
    %c0_53 = arith.constant 0 : index
    %c0_54 = arith.constant 0 : index
    %c2 = arith.constant 2 : index
    %c0_55 = arith.constant 0 : index
    %58 = vector.load %arg2[%c0_52, %c0_53, %c0_54, %c2, %c0_55] : memref<1x8x1x4x8xbf16, #tpu.memory_space<vmem>>, vector<1x8x1x1x8xbf16>
    %59 = vector.shape_cast %58 : vector<1x8x1x1x8xbf16> to vector<8x8xbf16>
    %cst_56 = arith.constant 3.535160e-01 : bf16
    %60 = vector.broadcast %cst_56 : bf16 to vector<8x8xbf16>
    %61 = arith.mulf %59, %60 : vector<8x8xbf16>
    %c0_57 = arith.constant 0 : index
    %c0_58 = arith.constant 0 : index
    %c0_59 = arith.constant 0 : index
    %c2_60 = arith.constant 2 : index
    %c0_61 = arith.constant 0 : index
    %62 = vector.load %arg3[%c0_57, %c0_58, %c0_59, %c2_60, %c0_61] : memref<1x8x1x4x8xbf16, #tpu.memory_space<vmem>>, vector<1x8x1x1x8xbf16>
    %63 = vector.shape_cast %62 : vector<1x8x1x1x8xbf16> to vector<8x8xbf16>
    %c0_62 = arith.constant 0 : index
    %c0_63 = arith.constant 0 : index
    %c0_64 = arith.constant 0 : index
    %c2_65 = arith.constant 2 : index
    %c0_66 = arith.constant 0 : index
    %64 = vector.load %arg4[%c0_62, %c0_63, %c0_64, %c2_65, %c0_66] : memref<1x8x1x4x8xbf16, #tpu.memory_space<vmem>>, vector<1x8x1x1x8xbf16>
    %65 = vector.shape_cast %64 : vector<1x8x1x1x8xbf16> to vector<8x8xbf16>
    %cst_67 = arith.constant dense<0.000000e+00> : vector<8x8xf32>
    %66 = tpu.matmul %61, %63, %cst_67 {dimension_numbers = #tpu.dot_dimension_numbers<[1], [1], [0], [0], [0, 0, 1, 0], [], []>} : vector<8x8xbf16>, vector<8x8xbf16>, vector<8x8xf32> -> vector<8x8xf32>
    %cst_68 = arith.constant dense<0xFF800000> : vector<8xf32>
    %67 = vector.multi_reduction <maximumf>, %66, %cst_68 [1] : vector<8x8xf32> to vector<8xf32>
    %68 = vector.shape_cast %67 : vector<8xf32> to vector<8x1xf32>
    %69 = vector.broadcast %68 : vector<8x1xf32> to vector<8x8xf32>
    %70 = arith.subf %66, %69 : vector<8x8xf32>
    %71 = math.exp %70 : vector<8x8xf32>
    %cst_69 = arith.constant dense<0.000000e+00> : vector<8xf32>
    %72 = vector.multi_reduction <add>, %71, %cst_69 [1] : vector<8x8xf32> to vector<8xf32>
    %73 = vector.shape_cast %72 : vector<8xf32> to vector<8x1xf32>
    %cst_70 = arith.constant 1.000000e+00 : f32
    %74 = vector.broadcast %cst_70 : f32 to vector<8x1xf32>
    %75 = arith.divf %74, %73 : vector<8x1xf32>
    %76 = vector.broadcast %75 : vector<8x1xf32> to vector<8x8xf32>
    %77 = arith.mulf %71, %76 : vector<8x8xf32>
    %78 = arith.truncf %77 : vector<8x8xf32> to vector<8x8xbf16>
    %c0_71 = arith.constant 0 : index
    %c2_72 = arith.constant 2 : index
    %c0_73 = arith.constant 0 : index
    %c0_74 = arith.constant 0 : index
    %79 = vector.load %arg5[%c0_71, %c2_72, %c0_73, %c0_74] : memref<1x4x8x8xbf16, #tpu.memory_space<vmem>>, vector<1x1x8x8xbf16>
    %80 = vector.shape_cast %79 : vector<1x1x8x8xbf16> to vector<8x8xbf16>
    %81 = vector.shape_cast %78 : vector<8x8xbf16> to vector<1x1x8x8xbf16>
    tpu.vector_store %arg5[%c0_71, %c2_72, %c0_73, %c0_74], %81 {strides = array<i32>} : memref<1x4x8x8xbf16, #tpu.memory_space<vmem>>, vector<1x1x8x8xbf16>,
    %cst_75 = arith.constant dense<0.000000e+00> : vector<8x8xf32>
    %82 = tpu.matmul %78, %65, %cst_75 {dimension_numbers = #tpu.dot_dimension_numbers<[1], [0], [0], [1], [0, 0, 1, 1], [], []>} : vector<8x8xbf16>, vector<8x8xbf16>, vector<8x8xf32> -> vector<8x8xf32>
    %83 = arith.truncf %82 : vector<8x8xf32> to vector<8x8xbf16>
    %c0_76 = arith.constant 0 : index
    %c0_77 = arith.constant 0 : index
    %c16 = arith.constant 16 : index
    %84 = vector.load %arg6[%c0_76, %c0_77, %c16] : memref<1x8x32xbf16, #tpu.memory_space<vmem>>, vector<1x8x8xbf16>
    %85 = vector.shape_cast %84 : vector<1x8x8xbf16> to vector<8x8xbf16>
    %86 = vector.shape_cast %83 : vector<8x8xbf16> to vector<1x8x8xbf16>
    tpu.vector_store %arg6[%c0_76, %c0_77, %c16], %86 {strides = array<i32>} : memref<1x8x32xbf16, #tpu.memory_space<vmem>>, vector<1x8x8xbf16>,
    %c0_78 = arith.constant 0 : index
    %c0_79 = arith.constant 0 : index
    %c0_80 = arith.constant 0 : index
    %c3 = arith.constant 3 : index
    %c0_81 = arith.constant 0 : index
    %87 = vector.load %arg2[%c0_78, %c0_79, %c0_80, %c3, %c0_81] : memref<1x8x1x4x8xbf16, #tpu.memory_space<vmem>>, vector<1x8x1x1x8xbf16>
    %88 = vector.shape_cast %87 : vector<1x8x1x1x8xbf16> to vector<8x8xbf16>
    %cst_82 = arith.constant 3.535160e-01 : bf16
    %89 = vector.broadcast %cst_82 : bf16 to vector<8x8xbf16>
    %90 = arith.mulf %88, %89 : vector<8x8xbf16>
    %c0_83 = arith.constant 0 : index
    %c0_84 = arith.constant 0 : index
    %c0_85 = arith.constant 0 : index
    %c3_86 = arith.constant 3 : index
    %c0_87 = arith.constant 0 : index
    %91 = vector.load %arg3[%c0_83, %c0_84, %c0_85, %c3_86, %c0_87] : memref<1x8x1x4x8xbf16, #tpu.memory_space<vmem>>, vector<1x8x1x1x8xbf16>
    %92 = vector.shape_cast %91 : vector<1x8x1x1x8xbf16> to vector<8x8xbf16>
    %c0_88 = arith.constant 0 : index
    %c0_89 = arith.constant 0 : index
    %c0_90 = arith.constant 0 : index
    %c3_91 = arith.constant 3 : index
    %c0_92 = arith.constant 0 : index
    %93 = vector.load %arg4[%c0_88, %c0_89, %c0_90, %c3_91, %c0_92] : memref<1x8x1x4x8xbf16, #tpu.memory_space<vmem>>, vector<1x8x1x1x8xbf16>
    %94 = vector.shape_cast %93 : vector<1x8x1x1x8xbf16> to vector<8x8xbf16>
    %cst_93 = arith.constant dense<0.000000e+00> : vector<8x8xf32>
    %95 = tpu.matmul %90, %92, %cst_93 {dimension_numbers = #tpu.dot_dimension_numbers<[1], [1], [0], [0], [0, 0, 1, 0], [], []>} : vector<8x8xbf16>, vector<8x8xbf16>, vector<8x8xf32> -> vector<8x8xf32>
    %cst_94 = arith.constant dense<0xFF800000> : vector<8xf32>
    %96 = vector.multi_reduction <maximumf>, %95, %cst_94 [1] : vector<8x8xf32> to vector<8xf32>
    %97 = vector.shape_cast %96 : vector<8xf32> to vector<8x1xf32>
    %98 = vector.broadcast %97 : vector<8x1xf32> to vector<8x8xf32>
    %99 = arith.subf %95, %98 : vector<8x8xf32>
    %100 = math.exp %99 : vector<8x8xf32>
    %cst_95 = arith.constant dense<0.000000e+00> : vector<8xf32>
    %101 = vector.multi_reduction <add>, %100, %cst_95 [1] : vector<8x8xf32> to vector<8xf32>
    %102 = vector.shape_cast %101 : vector<8xf32> to vector<8x1xf32>
    %cst_96 = arith.constant 1.000000e+00 : f32
    %103 = vector.broadcast %cst_96 : f32 to vector<8x1xf32>
    %104 = arith.divf %103, %102 : vector<8x1xf32>
    %105 = vector.broadcast %104 : vector<8x1xf32> to vector<8x8xf32>
    %106 = arith.mulf %100, %105 : vector<8x8xf32>
    %107 = arith.truncf %106 : vector<8x8xf32> to vector<8x8xbf16>
    %c0_97 = arith.constant 0 : index
    %c3_98 = arith.constant 3 : index
    %c0_99 = arith.constant 0 : index
    %c0_100 = arith.constant 0 : index
    %108 = vector.load %arg5[%c0_97, %c3_98, %c0_99, %c0_100] : memref<1x4x8x8xbf16, #tpu.memory_space<vmem>>, vector<1x1x8x8xbf16>
    %109 = vector.shape_cast %108 : vector<1x1x8x8xbf16> to vector<8x8xbf16>
    %110 = vector.shape_cast %107 : vector<8x8xbf16> to vector<1x1x8x8xbf16>
    tpu.vector_store %arg5[%c0_97, %c3_98, %c0_99, %c0_100], %110 {strides = array<i32>} : memref<1x4x8x8xbf16, #tpu.memory_space<vmem>>, vector<1x1x8x8xbf16>,
    %cst_101 = arith.constant dense<0.000000e+00> : vector<8x8xf32>
    %111 = tpu.matmul %107, %94, %cst_101 {dimension_numbers = #tpu.dot_dimension_numbers<[1], [0], [0], [1], [0, 0, 1, 1], [], []>} : vector<8x8xbf16>, vector<8x8xbf16>, vector<8x8xf32> -> vector<8x8xf32>
    %112 = arith.truncf %111 : vector<8x8xf32> to vector<8x8xbf16>
    %c0_102 = arith.constant 0 : index
    %c0_103 = arith.constant 0 : index
    %c24 = arith.constant 24 : index
    %113 = vector.load %arg6[%c0_102, %c0_103, %c24] : memref<1x8x32xbf16, #tpu.memory_space<vmem>>, vector<1x8x8xbf16>
    %114 = vector.shape_cast %113 : vector<1x8x8xbf16> to vector<8x8xbf16>
    %115 = vector.shape_cast %112 : vector<8x8xbf16> to vector<1x8x8xbf16>
    tpu.vector_store %arg6[%c0_102, %c0_103, %c24], %115 {strides = array<i32>} : memref<1x8x32xbf16, #tpu.memory_space<vmem>>, vector<1x8x8xbf16>,
    return
  }
  func.func @transform_0(%arg0: i32, %arg1: i32) -> (i32, i32, i32, i32, i32) {
    %c0_i32 = arith.constant 0 : i32
    %c0_i32_0 = arith.constant 0 : i32
    %c0_i32_1 = arith.constant 0 : i32
    %c0_i32_2 = arith.constant 0 : i32
    return %arg0, %arg1, %c0_i32, %c0_i32_0, %c0_i32_1 : i32, i32, i32, i32, i32
  }
  func.func @transform_1(%arg0: i32, %arg1: i32) -> (i32, i32, i32, i32, i32) {
    %c0_i32 = arith.constant 0 : i32
    %c1_i32 = arith.constant 1 : i32
    %c0_i32_0 = arith.constant 0 : i32
    %c0_i32_1 = arith.constant 0 : i32
    %c0_i32_2 = arith.constant 0 : i32
    return %arg0, %c0_i32, %c1_i32, %c0_i32_0, %c0_i32_1 : i32, i32, i32, i32, i32
  }
  func.func @transform_2(%arg0: i32, %arg1: i32) -> (i32, i32, i32, i32, i32) {
    %c0_i32 = arith.constant 0 : i32
    %c2_i32 = arith.constant 2 : i32
    %c0_i32_0 = arith.constant 0 : i32
    %c0_i32_1 = arith.constant 0 : i32
    %c0_i32_2 = arith.constant 0 : i32
    return %arg0, %c0_i32, %c2_i32, %c0_i32_0, %c0_i32_1 : i32, i32, i32, i32, i32
  }
  func.func @transform_3(%arg0: i32, %arg1: i32) -> (i32, i32, i32, i32) {
    %c0_i32 = arith.constant 0 : i32
    %c0_i32_0 = arith.constant 0 : i32
    %c0_i32_1 = arith.constant 0 : i32
    return %arg0, %c0_i32, %arg1, %c0_i32_0 : i32, i32, i32, i32
  }
  func.func @transform_4(%arg0: i32, %arg1: i32) -> (i32, i32, i32) {
    %c0_i32 = arith.constant 0 : i32
    %c0_i32_0 = arith.constant 0 : i32
    return %arg0, %arg1, %c0_i32 : i32, i32, i32
  }
}

</mosaic_0001>

<bundles_post_ra>
// kernel: attention_forward.3
= control target key start
LH: loop header
LB: loop body
LE: loop exit
PB: predicated region body
PF: predicated region fallthrough
CT: control target
= control target key end

     0   :  { %8 = vsyncpa [#allocation4], 0  ;;  %s237_s0 = inlined_call_operand.hbm [shape: f32[16,32], index: 0, kind: input, shape index: {}]   ;;  %s238_s1 = inlined_call_operand.hbm [shape: bf16[32,96], index: 1, kind: input, shape index: {}]   ;;  %s239_s2 = inlined_call_operand.vmem [shape: f32[1,96], index: 2, kind: input, shape index: {}]   ;;  %s240_s3 = inlined_call_operand.vmem [shape: bf16[16,96], index: 3, kind: output, shape index: {}]  }
   0x1   :  { %s14_s14 = sshll.u32 %s237_s0, 4  ;;  %s15_s14 = int_to_ptr.hbm [resolvable:$true] %s14_s14 }
   0x2   :  { %9 = vsyncpa [#allocation6], 0  ;;  %s191_s15 = smov [#allocation3]   ;;  %s27_s19 = sshll.u32 %s238_s1, 4  ;;  %s28_s19 = int_to_ptr.hbm [resolvable:$true] %s27_s19 }
   0x3   :  { %s16_s16 = sshll.u32 %s191_s15, 4  ;;  %s192_s20 = smov 128   ;;  %s17_s16 = int_to_ptr.vmem [resolvable:$true] %s16_s16 }
   0x4   :  { %s193_s21 = smov 8   ;;  %s194_s22 = smov [#allocation5]  }
   0x5   :  { %22 = dma.hbm_to_vmem [thread:$0]  %s15_s14, 256, %s17_s16, [#allocation4], %s192_s20, %s192_s20, %s193_s21  }
   0x6   :  { %s29_s23 = sshll.u32 %s194_s22, 4  ;;  %s195_s24 = smov 64   ;;  %s30_s23 = int_to_ptr.vmem [resolvable:$true] %s29_s23 }
   0x7   :  { %s196_s25 = smov 4  }
   0x8   :  { %35 = dma.hbm_to_vmem [thread:$0]  %s28_s19, 256, %s30_s23, [#allocation6], %s195_s24, %s195_s24, %s196_s25  }
   0x9   :  { %187 = dma.done.wait [#allocation4], 256  }
   0xa   :  { %188 = vsyncadd [#allocation4], 4294967040 }
   0xb   :  { %189 = dma.done.wait [#allocation6], 256  }
   0xc   :  { %190 = vsyncadd [#allocation6], 4294967040  ;;  %vm51_vm0 = vcmask 785408   ;;  %v197_v0 = vmov 0.0   ;;  %v130_v1 = vld [vmem:[#allocation5 + $0x8] sm:$0xff]  ;;  %v129_v2 = vld [vmem:[#allocation5] sm:$0xff] }
   0xd   :  { %52 = vst.msk [vmem:[#allocation2] sm:$0xff] %vm51_vm0, %v197_v0  ;;  %85 = vmatpush.bf16.msra.mxu0 %v130_v1  ;;  %v56_v3 = vld [vmem:[#allocation3] sm:$0xff]  ;;  %v57_v4 = vld [vmem:[#allocation3 + $0x8] sm:$0xff]  ;;  %vm75_vm1 = vcmask 261120   ;;  %v138_v10 = vld [vmem:[%s239_s2] ss:$0 sm:$0xff] }
   0xe   :  { %53 = vst.msk [vmem:[#allocation2 + $0x8] sm:$0xff] %vm51_vm0, %v197_v0  ;;  %v58_v5 = vpack.c.bf16 %v57_v4, %v56_v3  ;;  %vm111_vm2 = vcmask 781312  }
  0x11   :  { %86 = vmatpush.bf16.msra.mxu0 %v129_v2 }
  0x14   :  { %128 = vmatmul.msk.bf16.vlgmr.msra.gmra.mxu0 %vm75_vm1, %v58_v5  ;;  %v54_v6 = vld [vmem:[#allocation2] sm:$0xff] }
  0x15   :  { %v55_v9 = vld [vmem:[#allocation2 + $0x8] sm:$0xff] }
  0x91   :  { %v88_v7 = vpop.f32.mrf.mxu0 }
  0x92   :  { %v93_v8 = vadd.f32 %v88_v7, %v54_v6 }
  0x94   :  { %96 = vst.msk [vmem:[#allocation2] sm:$0xff] %vm51_vm0, %v93_v8 }
  0x99   :  { %v90_v11 = vpop.f32.mrf.mxu0 }
  0x9a   :  { %v94_v12 = vadd.f32 %v90_v11, %v55_v9 }
  0x9b   :  { %v101_v13 = vld [vmem:[#allocation2] sm:$0xff] }
  0x9c   :  { %v107_v14 = vadd.f32 %v138_v10, %v101_v13  ;;  %97 = vst.msk [vmem:[#allocation2 + $0x8] sm:$0xff] %vm51_vm0, %v94_v12 }
  0x9e   :  { %v109_v15 = vpack.c.bf16 %v107_v14, %v107_v14 }
  0xa0   :  { %112 = vst.msk [vmem:[%s240_s3] sm:$0xf] %vm111_vm2, %v109_v15 }
  0xa3   :  { %v102_v16 = vld [vmem:[#allocation2 + $0x8] sm:$0xff] }
  0xa4   :  { %v108_v17 = vadd.f32 %v138_v10, %v102_v16 }
  0xa6   :  { %v110_v18 = vpack.c.bf16 %v108_v17, %v108_v17 }
  0xa8   :  { %113 = vst.msk [vmem:[%s240_s3 + $0x4] sm:$0xf] %vm111_vm2, %v110_v18 }
  0xa9   :  { %118 = vsyncpa [#allocation4], 1 }
  0xaa   :  { %119 = vsyncpa [#allocation6], 1 }

// kernel: attention_forward.5
= control target key start
LH: loop header
LB: loop body
LE: loop exit
PB: predicated region body
PF: predicated region fallthrough
CT: control target
= control target key end

     0   :  { %vm20_vm0 = vcmask 261120   ;;  %v148_v1 = vmov 0.0   ;;  %s194_s0 = inlined_call_operand.vmem [shape: bf16[16,32], index: 0, kind: input, shape index: {}]   ;;  %s195_s1 = inlined_call_operand.vmem [shape: bf16[32,32], index: 1, kind: input, shape index: {}]   ;;  %s196_s2 = inlined_call_operand.vmem [shape: f32[1,32], index: 2, kind: input, shape index: {}]   ;;  %s197_s3 = inlined_call_operand.hbm [shape: f32[16,32], index: 3, kind: output, shape index: {}]  }
   0x1   :  { %v116_v0 = vld [vmem:[%s195_s1 + $0x8] sm:$0xff]  ;;  %21 = vst.msk [vmem:[#allocation2] sm:$0xff] %vm20_vm0, %v148_v1 }
   0x2   :  { %8 = vsyncpa [#allocation4], 0  ;;  %58 = vmatpush.bf16.msra.mxu0 %v116_v0  ;;  %v115_v2 = vld [vmem:[%s195_s1] sm:$0xff]  ;;  %22 = vst.msk [vmem:[#allocation2 + $0x8] sm:$0xff] %vm20_vm0, %v148_v1  ;;  %s89_s22 = sshll.u32 %s197_s3, 4  ;;  %s151_s23 = smov 8   ;;  %s90_s22 = int_to_ptr.hbm [resolvable:$true] %s89_s22 }
   0x3   :  { %v114_v3 = vld [vmem:[%s194_s0] sm:$0xff]  ;;  %s149_s0 = smov [#allocation3]  }
   0x4   :  { %v121_v8 = vld [vmem:[%s196_s2] ss:$0 sm:$0xff]  ;;  %s87_s1 = sshll.u32 %s149_s0, 4  ;;  %s150_s2 = smov 128   ;;  %s88_s1 = int_to_ptr.vmem [resolvable:$true] %s87_s1 }
   0x6   :  { %59 = vmatpush.bf16.msra.mxu0 %v115_v2 }
   0x8   :  { %v23_v4 = vld [vmem:[#allocation2] sm:$0xff] }
   0x9   :  { %113 = vmatmul.msk.bf16.vlgmr.msra.gmra.mxu0 %vm20_vm0, %v114_v3  ;;  %v24_v7 = vld [vmem:[#allocation2 + $0x8] sm:$0xff] }
  0x86   :  { %v61_v5 = vpop.f32.mrf.mxu0 }
  0x87   :  { %v66_v6 = vadd.f32 %v61_v5, %v23_v4 }
  0x89   :  { %68 = vst.msk [vmem:[#allocation2] sm:$0xff] %vm20_vm0, %v66_v6 }
  0x8e   :  { %v63_v9 = vpop.f32.mrf.mxu0 }
  0x8f   :  { %v67_v10 = vadd.f32 %v63_v9, %v24_v7 }
  0x90   :  { %v73_v11 = vld [vmem:[#allocation2] sm:$0xff] }
  0x91   :  { %69 = vst.msk [vmem:[#allocation2 + $0x8] sm:$0xff] %vm20_vm0, %v67_v10  ;;  %v79_v12 = vadd.f32 %v121_v8, %v73_v11 }
  0x93   :  { %81 = vst.msk [vmem:[#allocation3] sm:$0xff] %vm20_vm0, %v79_v12 }
  0x98   :  { %v74_v13 = vld [vmem:[#allocation2 + $0x8] sm:$0xff] }
  0x99   :  { %v80_v14 = vadd.f32 %v121_v8, %v74_v13 }
  0x9b   :  { %82 = vst.msk [vmem:[#allocation3 + $0x8] sm:$0xff] %vm20_vm0, %v80_v14 }
  0x9c   :  { %95 = dma.vmem_to_hbm [thread:$0]  %s88_s1, 256, %s90_s22, [#allocation4], %s150_s2, %s150_s2, %s151_s23  }
  0x9d   :  { %146 = dma.done.wait [#allocation4], 256  }
  0x9e   :  { %147 = vsyncadd [#allocation4], 4294967040 }
  0x9f   :  { %100 = vsyncpa [#allocation4], 1 }

// kernel: attention_forward.4
= control target key start
LH: loop header
LB: loop body
LE: loop exit
PB: predicated region body
PF: predicated region fallthrough
CT: control target
= control target key end

     0   :  { %10 = vsyncpa [#allocation6], 0  ;;  %s2458_s0 = inlined_call_operand.vmem [shape: bf16[2,8,3,4,8], index: 0, kind: input, shape index: {}, may-alias: {0,1,2}]   ;;  %s2459_s1 = inlined_call_operand.vmem [shape: bf16[2,8,3,4,8], index: 1, kind: input, shape index: {}, may-alias: {0,1,2}]   ;;  %s2460_s2 = inlined_call_operand.vmem [shape: bf16[2,8,3,4,8], index: 2, kind: input, shape index: {}, may-alias: {0,1,2}]   ;;  %s2461_s3 = inlined_call_operand.hbm [shape: bf16[2,4,8,8], index: 3, kind: output, shape index: {0}]   ;;  %s2462_s4 = inlined_call_operand.vmem [shape: bf16[2,8,32], index: 4, kind: output, shape index: {1}]  }
   0x1   :  { %12 = vsyncpa [#allocation6 + $0x1], 0  ;;  %s1969_s15 = smov 0   ;;  %s1971_s16 = smov 0  }
   0x2   :  { %s1973_s17 = smov 0   ;;  %s1975_s18 = smov 0  }
   0x3   :  { %s1977_s19 = smov 0   ;;  %s1979_s20 = smov 0  }
   0x4 LB: > { %s1733_s21 = sadd.s32 4294967295, %s1937_s20   ;;  %s1734_s22 = sadd.s32 4294967294, %s1937_s20   ;;  %s1937_s20 = sphi %s1979_s20, %s18_s20   ;;  %s1933_s19 = sphi %s1977_s19, %s2470_s19   ;;  %s1929_s18 = sphi %s1975_s18, %s2469_s18   ;;  %s1925_s17 = sphi %s1973_s17, %s2468_s17   ;;  %s1921_s16 = sphi %s1971_s16, %s2467_s16   ;;  %s1917_s15 = sphi %s1969_s15, %s2466_s15  }
   0x5   : > { %s30_s23 = sadd.s32 1, %s1933_s19  ;;  %s39_s24 = sadd.s32 1, %s1925_s17 }
   0x6   : > { %p32_p0 = scmp.ge.s32.totalorder %s30_s23, 2  ;;  %p46_p1 = scmp.ne.s32.totalorder %s1925_s17, %s1921_s16 }
   0x7   : > { %p47_p2 = scmp.eq.s32.totalorder %s1937_s20, 0  ;;  %p130_p3 = scmp.eq.s32.totalorder %s1733_s21, 1 }
   0x8   : > { %s2472_s23 = smov (%p32_p0, %s30_s23), 0  ;;  %p135_p6 = scmp.ne.s32.totalorder %s1921_s16, %s1917_s15 }
   0x9   : > { %p2008_p4 = por %p47_p2, %p46_p1  ;;  %p2012_p5 = por %p130_p3, %p46_p1 }
   0xa   : > { %s34_s27 = ssub.s32 %s1933_s19, %s2472_s23  ;;  %p136_p8 = scmp.eq.s32.totalorder %s1734_s22, 1 }
   0xb   : > { %p37_p7 = scmp.eq.s32.totalorder %s34_s27, 0  ;;  %p1736_p10 = scmp.ge.s32.totalorder %s1937_s20, 2 }
   0xc   : > { %p2023_p9 = por %p136_p8, %p135_p6 }
   0xd   : > { %s2021_s28 = scalar_select %p37_p7, %s1925_s17, %s39_s24  }
   0xe   : > { %180 = sbr.rel (%p1736_p10) target bundleno = 58 (0x3a), region = 16 }
  0x13   : > { %183 = sbr.rel (!%p2008_p4) target bundleno = 32 (0x20), region = 20  ;;  %s185_s30 = sand.u32 (%p2008_p4), 1, %s1925_s17  }
  0x14   : > { %s1782_s5 = smul.u32 (%p2008_p4), 48, %s1933_s19  ;;  %s1737_s6 = sshll.u32 (%p2008_p4), %s185_s30, 4 }
  0x15   : > { %s187_s10 = scalar_lea.vmem (%p2008_p4), [#allocation2], %s1737_s6 }
  0x16   : > { %s193_s9 = scalar_lea.vmem (%p2008_p4), %s2458_s0, %s1782_s5 }
  0x17   : > { %v210_v0 = vld [vmem:[%s193_s9] sm:$0x3] (%p2008_p4)  ;;  %v212_v1 = vld [vmem:[%s193_s9 + $0x6] sm:$0x3] (%p2008_p4)  ;;  %v214_v2 = vld [vmem:[%s193_s9 + $0xc] sm:$0x3] (%p2008_p4) }
  0x18   : > { %211 = vst [vmem:[%s187_s10] sm:$0x3] %v210_v0  ;;  %v216_v3 = vld [vmem:[%s193_s9 + $0x12] sm:$0x3]  ;;  %v218_v4 = vld [vmem:[%s193_s9 + $0x18] sm:$0x3] }
  0x19   : > { %213 = vst [vmem:[%s187_s10 + $0x2] sm:$0x3] %v212_v1  ;;  %v220_v5 = vld [vmem:[%s193_s9 + $0x1e] sm:$0x3]  ;;  %v222_v6 = vld [vmem:[%s193_s9 + $0x24] sm:$0x3] }
  0x1a   : > { %215 = vst [vmem:[%s187_s10 + $0x4] sm:$0x3] %v214_v2  ;;  %v224_v7 = vld [vmem:[%s193_s9 + $0x2a] sm:$0x3] }
  0x1b   : > { %217 = vst [vmem:[%s187_s10 + $0x6] sm:$0x3] %v216_v3 }
  0x1c   : > { %219 = vst [vmem:[%s187_s10 + $0x8] sm:$0x3] %v218_v4 }
  0x1d   : > { %221 = vst [vmem:[%s187_s10 + $0xa] sm:$0x3] %v220_v5 }
  0x1e   : > { %223 = vst [vmem:[%s187_s10 + $0xc] sm:$0x3] %v222_v6 }
  0x1f   : > { %225 = vst [vmem:[%s187_s10 + $0xe] sm:$0x3] %v224_v7 }
  0x20 PF: > { %265 = sbr.rel (!%p2008_p4) target bundleno = 45 (0x2d), region = 61  ;;  %s267_s11 = sand.u32 (%p2008_p4), 1, %s1925_s17  }
  0x21   : > { %s1740_s12 = smul.u32 (%p2008_p4), 48, %s1933_s19  ;;  %s1739_s13 = sshll.u32 (%p2008_p4), %s267_s11, 4 }
  0x22   : > { %s269_s24 = scalar_lea.vmem (%p2008_p4), [#allocation3], %s1739_s13 }
  0x23   : > { %s1626_s22 = scalar_lea.vmem (%p2008_p4), %s2459_s1, %s1740_s12 }
  0x24   : > { %v1741_v8 = vld [vmem:[%s1626_s22 + $0x2] sm:$0x3] (%p2008_p4)  ;;  %v1742_v9 = vld [vmem:[%s1626_s22 + $0x8] sm:$0x3] (%p2008_p4)  ;;  %v1743_v10 = vld [vmem:[%s1626_s22 + $0xe] sm:$0x3] (%p2008_p4) }
  0x25   : > { %291 = vst [vmem:[%s269_s24] sm:$0x3] %v1741_v8  ;;  %v1744_v11 = vld [vmem:[%s1626_s22 + $0x14] sm:$0x3]  ;;  %v1745_v12 = vld [vmem:[%s1626_s22 + $0x1a] sm:$0x3] }
  0x26   : > { %293 = vst [vmem:[%s269_s24 + $0x2] sm:$0x3] %v1742_v9  ;;  %v1746_v13 = vld [vmem:[%s1626_s22 + $0x20] sm:$0x3]  ;;  %v1747_v14 = vld [vmem:[%s1626_s22 + $0x26] sm:$0x3] }
  0x27   : > { %295 = vst [vmem:[%s269_s24 + $0x4] sm:$0x3] %v1743_v10  ;;  %v1748_v15 = vld [vmem:[%s1626_s22 + $0x2c] sm:$0x3] }
  0x28   : > { %297 = vst [vmem:[%s269_s24 + $0x6] sm:$0x3] %v1744_v11 }
  0x29   : > { %299 = vst [vmem:[%s269_s24 + $0x8] sm:$0x3] %v1745_v12 }
  0x2a   : > { %301 = vst [vmem:[%s269_s24 + $0xa] sm:$0x3] %v1746_v13 }
  0x2b   : > { %303 = vst [vmem:[%s269_s24 + $0xc] sm:$0x3] %v1747_v14 }
  0x2c   : > { %305 = vst [vmem:[%s269_s24 + $0xe] sm:$0x3] %v1748_v15 }
  0x2d PF: > { %345 = sbr.rel (!%p2008_p4) target bundleno = 58 (0x3a), region = 102  ;;  %s347_s27 = sand.u32 (%p2008_p4), 1, %s1925_s17  }
  0x2e   : > { %s1750_s30 = smul.u32 (%p2008_p4), 48, %s1933_s19  ;;  %s1749_s5 = sshll.u32 (%p2008_p4), %s347_s27, 4 }
  0x2f   : > { %s349_s9 = scalar_lea.vmem (%p2008_p4), [#allocation4], %s1749_s5 }
  0x30   : > { %s1632_s8 = scalar_lea.vmem (%p2008_p4), %s2460_s2, %s1750_s30 }
  0x31   : > { %v1751_v16 = vld [vmem:[%s1632_s8 + $0x4] sm:$0x3] (%p2008_p4)  ;;  %v1752_v17 = vld [vmem:[%s1632_s8 + $0xa] sm:$0x3] (%p2008_p4)  ;;  %v1753_v18 = vld [vmem:[%s1632_s8 + $0x10] sm:$0x3] (%p2008_p4) }
  0x32   : > { %371 = vst [vmem:[%s349_s9] sm:$0x3] %v1751_v16  ;;  %v1754_v19 = vld [vmem:[%s1632_s8 + $0x16] sm:$0x3]  ;;  %v1755_v20 = vld [vmem:[%s1632_s8 + $0x1c] sm:$0x3] }
  0x33   : > { %373 = vst [vmem:[%s349_s9 + $0x2] sm:$0x3] %v1752_v17  ;;  %v1756_v21 = vld [vmem:[%s1632_s8 + $0x22] sm:$0x3]  ;;  %v1757_v22 = vld [vmem:[%s1632_s8 + $0x28] sm:$0x3] }
  0x34   : > { %375 = vst [vmem:[%s349_s9 + $0x4] sm:$0x3] %v1753_v18  ;;  %v1758_v23 = vld [vmem:[%s1632_s8 + $0x2e] sm:$0x3] }
  0x35   : > { %377 = vst [vmem:[%s349_s9 + $0x6] sm:$0x3] %v1754_v19 }
  0x36   : > { %379 = vst [vmem:[%s349_s9 + $0x8] sm:$0x3] %v1755_v20 }
  0x37   : > { %381 = vst [vmem:[%s349_s9 + $0xa] sm:$0x3] %v1756_v21 }
  0x38   : > { %383 = vst [vmem:[%s349_s9 + $0xc] sm:$0x3] %v1757_v22 }
  0x39   : > { %385 = vst [vmem:[%s349_s9 + $0xe] sm:$0x3] %v1758_v23 }
  0x3a PF: > { %p1759_p11 = scmp.ge.s32.totalorder %s1937_s20, 1  ;;  %p424_p12 = scmp.lt.s32.totalorder %s1937_s20, 3 }
  0x3c   : > { %p425_p13 = pnand %p1759_p11, %p424_p12 }
  0x3d   : > { %s431_s25 = sand.u32 (!%p425_p13), 1, %s1921_s16   ;;  %p486_p0 = scmp.lt.s32.totalorder (!%p425_p13), %s1929_s18, 1 }
  0x3e   : > { %428 = sbr.rel (%p425_p13) target bundleno = 1167 (0x48f), region = 143  ;;  %s2056_s10 = sshll.u32 (!%p425_p13), %s431_s25, 4 }
  0x3f   : > { %s2059_s11 = scalar_lea.vmem (!%p425_p13), [#allocation3], %s2056_s10  ;;  %s2064_s12 = scalar_lea.vmem (!%p425_p13), [#allocation2], %s2056_s10 }
  0x40   : > { %s2086_s13 = scalar_lea.vmem (!%p425_p13), [#allocation4], %s2056_s10  ;;  %s2322_s14 = scalar_lea.vmem (!%p425_p13), [#allocation5], %s2056_s10 }
  0x41   : > { %s1939_s5 = smov (!%p425_p13), 8   ;;  %s1940_s6 = smov (!%p425_p13), 24  }
  0x42   : > { %s1781_s7 = sshll.u32 (!%p425_p13), %s1929_s18, 4 }
  0x43   : > { %v526_v24 = vld [vmem:[%s2059_s11] sm:$0x1]  ;;  %v527_v25 = vld [vmem:[%s2059_s11 + $0x2] sm:$0x1]  ;;  %v496_v27 = vld [vmem:[%s2064_s12 + $0x4] sm:$0x1]  ;;  %s1574_s10 = scalar_lea.hbm %s2461_s3, %s1781_s7 }
  0x44   : > { %581 = vst [vmem:[#allocation1] ss:$4 sm:$0xff] %v526_v24  ;;  %v495_v26 = vld [vmem:[%s2064_s12 + $0x2] sm:$0x1]  ;;  %v494_v29 = vld [vmem:[%s2064_s12] sm:$0x1]  ;;  %v504_v33 = vunpack.c.l.bf16 %v496_v27 }
  0x45   : > { %586 = vst [vmem:[#allocation1 + $0x20] ss:$4 sm:$0xff] %v527_v25  ;;  %v503_v28 = vunpack.c.l.bf16 %v495_v26  ;;  %v528_v30 = vld [vmem:[%s2059_s11 + $0x4] sm:$0x1]  ;;  %v529_v31 = vld [vmem:[%s2059_s11 + $0x6] sm:$0x1]  ;;  %v502_v35 = vunpack.c.l.bf16 %v494_v29 }
  0x46   : > { %v497_v32 = vld [vmem:[%s2064_s12 + $0x6] sm:$0x1]  ;;  %v498_v38 = vld [vmem:[%s2064_s12 + $0x8] sm:$0x1]  ;;  %v512_v40 = vmul.f32 0.35351563, %v504_v33  ;;  %vm559_vm0 = vcmask 1041409  }
  0x47   : > { %v511_v36 = vmul.f32 0.35351563, %v503_v28  ;;  %v505_v39 = vunpack.c.l.bf16 %v497_v32  ;;  %v510_v41 = vmul.f32 0.35351563, %v502_v35  ;;  %v499_v43 = vld [vmem:[%s2064_s12 + $0xa] sm:$0x1]  ;;  %v506_v44 = vunpack.c.l.bf16 %v498_v38  ;;  %v530_v45 = vld [vmem:[%s2059_s11 + $0x8] sm:$0x1] }
  0x48   : > { %v531_v48 = vld [vmem:[%s2059_s11 + $0xa] sm:$0x1]  ;;  %v520_v49 = vpack.c.bf16 %v512_v40, %v512_v40  ;;  %v500_v51 = vld [vmem:[%s2064_s12 + $0xc] sm:$0x1]  ;;  %v507_v52 = vunpack.c.l.bf16 %v499_v43  ;;  %v501_v61 = vld [vmem:[%s2064_s12 + $0xe] sm:$0x1] }
  0x49   : > { %v519_v42 = vpack.c.bf16 %v511_v36, %v511_v36  ;;  %v513_v47 = vmul.f32 0.35351563, %v505_v39  ;;  %v518_v53 = vpack.c.bf16 %v510_v41, %v510_v41  ;;  %v514_v57 = vmul.f32 0.35351563, %v506_v44  ;;  %v532_v6 = vld [vmem:[%s2059_s11 + $0xc] sm:$0x1]  ;;  %v533_v10 = vld [vmem:[%s2059_s11 + $0xe] sm:$0x1] }
  0x4a   : > { %v508_v62 = vunpack.c.l.bf16 %v500_v51  ;;  %v552_v63 = vunpack.c.l.b16 %v520_v49  ;;  %v515_v1 = vmul.f32 0.35351563, %v507_v52  ;;  %vm562_vm1 = vcmask 1042434   ;;  %v536_v52 = vld [vmem:[%s2086_s13 + $0x4] sm:$0x1]  ;;  %s487_s21 = scalar_select %p486_p0, %s1929_s18, 1 }
  0x4b   : > { %v582_v34 = vld.sshfl [vmem:[#allocation1] sm:$0xff pattern:$0x73625140]  ;;  %v551_v54 = vunpack.c.l.b16 %v519_v42  ;;  %v521_v60 = vpack.c.bf16 %v513_v47, %v513_v47  ;;  %v550_v2 = vunpack.c.l.b16 %v518_v53  ;;  %v522_v5 = vpack.c.bf16 %v514_v57, %v514_v57  ;;  %s1879_s18 = scalar_lea.hbm %s2461_s3, 32 }
  0x4c   : > { %v587_v37 = vld.sshfl [vmem:[#allocation1 + $0x20] sm:$0xff pattern:$0x73625140]  ;;  %590 = vst [vmem:[#allocation1] ss:$4 sm:$0xff] %v528_v30  ;;  %v613_v58 = vunpack.c.l.b16 %v582_v34  ;;  %v509_v8 = vunpack.c.l.bf16 %v501_v61  ;;  %v516_v11 = vmul.f32 0.35351563, %v508_v62  ;;  %v523_v15 = vpack.c.bf16 %v515_v1, %v515_v1 }
  0x4d   : > { %594 = vst [vmem:[#allocation1 + $0x20] ss:$4 sm:$0xff] %v529_v31  ;;  %v614_v46 = vunpack.c.l.b16 %v587_v37  ;;  %v558_v3 = vrot.slane %v551_v54, 7  ;;  %v553_v9 = vunpack.c.l.b16 %v521_v60  ;;  %v561_v12 = vrot.slane %v552_v63, 6  ;;  %v534_v30 = vld [vmem:[%s2086_s13] sm:$0x1] }
  0x4e   : > { %vm565_vm2 = vcmask 1043459   ;;  %v554_v20 = vunpack.c.l.b16 %v522_v5  ;;  %v517_v22 = vmul.f32 0.35351563, %v509_v8  ;;  %v524_v25 = vpack.c.bf16 %v516_v11, %v516_v11  ;;  %v535_v34 = vld [vmem:[%s2086_s13 + $0x2] sm:$0x1]  ;;  %v538_v61 = vld [vmem:[%s2086_s13 + $0x8] sm:$0x1] }
  0x4f   : > { %v621_v59 = vrot.slane %v614_v46, 7  ;;  %v560_v16 = vsel %vm559_vm0, %v558_v3, %v550_v2  ;;  %v564_v23 = vrot.slane %v553_v9, 5  ;;  %vm568_vm3 = vcmask 1044484   ;;  %v539_v62 = vld [vmem:[%s2086_s13 + $0xa] sm:$0x1]  ;;  %s1764_s22 = sshll.u32 %s487_s21, 2 }
  0x50   : > { %v563_v26 = vsel %vm562_vm1, %v561_v12, %v560_v16  ;;  %v555_v28 = vunpack.c.l.b16 %v523_v15  ;;  %v567_v29 = vrot.slane %v554_v20, 4  ;;  %v525_v32 = vpack.c.bf16 %v517_v22, %v517_v22  ;;  %v540_v1 = vld [vmem:[%s2086_s13 + $0xc] sm:$0x1]  ;;  %v541_v2 = vld [vmem:[%s2086_s13 + $0xe] sm:$0x1]  ;;  %s2357_s30 = scalar_lea.vmem %s2462_s4, %s1764_s22 }
  0x51   : > { %v622_v7 = vsel %vm559_vm0, %v621_v59, %v613_v58  ;;  %v566_v33 = vsel %vm565_vm2, %v564_v23, %v563_v26  ;;  %vm571_vm4 = vcmask 1045509   ;;  %v556_v36 = vunpack.c.l.b16 %v524_v25  ;;  %v794_v5 = vld [vmem:[%s2059_s11] sm:$0x1]  ;;  %v796_v9 = vld [vmem:[%s2059_s11 + $0x4] sm:$0x1] }
  0x52   : > { %v570_v38 = vrot.slane %v555_v28, 3  ;;  %v569_v41 = vsel %vm568_vm3, %v567_v29, %v566_v33  ;;  %vm574_vm5 = vcmask 1046534   ;;  %v557_v44 = vunpack.c.l.b16 %v525_v32  ;;  %v799_v15 = vld [vmem:[%s2059_s11 + $0xa] sm:$0x1]  ;;  %v800_v23 = vld [vmem:[%s2059_s11 + $0xc] sm:$0x1] }
  0x53   : > { %v591_v50 = vld.sshfl [vmem:[#allocation1] sm:$0xff pattern:$0x73625140]  ;;  %vm577_vm6 = vcmask 1047559   ;;  %v573_v46 = vrot.slane %v556_v36, 2  ;;  %vm636_vm7 = vcmask 64512  }
  0x54   : > { %v595_v55 = vld.sshfl [vmem:[#allocation1 + $0x20] sm:$0xff pattern:$0x73625140]  ;;  %598 = vst [vmem:[#allocation1] ss:$4 sm:$0xff] %v530_v45  ;;  %v615_v56 = vunpack.c.l.b16 %v591_v50  ;;  %v576_v51 = vrot.slane %v557_v44, 1 }
  0x55   : > { %602 = vst [vmem:[#allocation1 + $0x20] ss:$4 sm:$0xff] %v531_v48  ;;  %v616_v0 = vunpack.c.l.b16 %v595_v55  ;;  %v572_v48 = vsel %vm571_vm4, %v570_v38, %v569_v41  ;;  %v537_v55 = vld [vmem:[%s2086_s13 + $0x6] sm:$0x1]  ;;  %v801_v25 = vld [vmem:[%s2059_s11 + $0xe] sm:$0x1] }
  0x56   : > { %v623_v4 = vrot.slane %v615_v56, 6  ;;  %v575_v54 = vsel %vm574_vm5, %v573_v46, %v572_v48  ;;  %v803_v36 = vld [vmem:[%s2086_s13 + $0x2] sm:$0x1]  ;;  %v804_v46 = vld [vmem:[%s2086_s13 + $0x4] sm:$0x1]  ;;  %vm743_vm8 = vcmask 1043456  }
  0x57   : > { %v625_v14 = vrot.slane %v616_v0, 5  ;;  %v578_v59 = vsel %vm577_vm6, %v576_v51, %v575_v54  ;;  %v805_v48 = vld [vmem:[%s2086_s13 + $0x6] sm:$0x1]  ;;  %v807_v54 = vld [vmem:[%s2086_s13 + $0xa] sm:$0x1]  ;;  %vm682_vm13 = vcmask 60416  }
  0x58   : > { %v624_v19 = vsel %vm562_vm1, %v623_v4, %v622_v7  ;;  %v579_v60 = vpack.c.b16 %v578_v59, %v578_v59  ;;  %v808_v59 = vld [vmem:[%s2086_s13 + $0xc] sm:$0x1] }
  0x59   : > { %v626_v27 = vsel %vm565_vm2, %v625_v14, %v624_v19 }
  0x5b   : > { %v599_v13 = vld.sshfl [vmem:[#allocation1] sm:$0xff pattern:$0x73625140] }
  0x5c   : > { %v603_v17 = vld.sshfl [vmem:[#allocation1 + $0x20] sm:$0xff pattern:$0x73625140]  ;;  %606 = vst [vmem:[#allocation1] ss:$4 sm:$0xff] %v532_v6  ;;  %v617_v18 = vunpack.c.l.b16 %v599_v13 }
  0x5d   : > { %610 = vst [vmem:[#allocation1 + $0x20] ss:$4 sm:$0xff] %v533_v10  ;;  %v618_v21 = vunpack.c.l.b16 %v603_v17  ;;  %v795_v6 = vld [vmem:[%s2059_s11 + $0x2] sm:$0x1]  ;;  %v797_v10 = vld [vmem:[%s2059_s11 + $0x6] sm:$0x1] }
  0x5e   : > { %v627_v24 = vrot.slane %v617_v18, 4  ;;  %v798_v13 = vld [vmem:[%s2059_s11 + $0x8] sm:$0x1] }
  0x5f   : > { %v629_v31 = vrot.slane %v618_v21, 3 }
  0x60   : > { %v628_v35 = vsel %vm568_vm3, %v627_v24, %v626_v27 }
  0x61   : > { %v630_v43 = vsel %vm571_vm4, %v629_v31, %v628_v35 }
  0x63   : > { %v607_v37 = vld.sshfl [vmem:[#allocation1] sm:$0xff pattern:$0x73625140] }
  0x64   : > { %v611_v39 = vld.sshfl [vmem:[#allocation1 + $0x20] sm:$0xff pattern:$0x73625140]  ;;  %v619_v40 = vunpack.c.l.b16 %v607_v37  ;;  %685 = vst [vmem:[#allocation1] ss:$4 sm:$0xff] %v534_v30 }
  0x65   : > { %v620_v42 = vunpack.c.l.b16 %v611_v39  ;;  %690 = vst [vmem:[#allocation1 + $0x20] ss:$4 sm:$0xff] %v535_v34  ;;  %v802_v34 = vld [vmem:[%s2086_s13] sm:$0x1] }
  0x66   : > { %v631_v45 = vrot.slane %v619_v40, 2 }
  0x67   : > { %v633_v47 = vrot.slane %v620_v42, 1 }
  0x68   : > { %v632_v49 = vsel %vm574_vm5, %v631_v45, %v630_v43 }
  0x69   : > { %v634_v50 = vsel %vm577_vm6, %v633_v47, %v632_v49 }
  0x6a   : > { %v635_v53 = vpack.c.b16 %v634_v50, %v634_v50 }
  0x6b   : > { %v2100_v56 = vld.sshfl [vmem:[#allocation1] sm:$0xff pattern:$0x73625140] }
  0x6c   : > { %v641_v57 = vsel %vm636_vm7, %v635_v53, 0  ;;  %v2103_v58 = vld.sshfl [vmem:[#allocation1 + $0x20] sm:$0xff pattern:$0x73625140]  ;;  %694 = vst [vmem:[#allocation1] ss:$4 sm:$0xff] %v536_v52 }
  0x6d   : > { %650 = vmatpush.bf16.xpose.msra.mxu0 %v641_v57  ;;  %698 = vst [vmem:[#allocation1 + $0x20] ss:$4 sm:$0xff] %v537_v55  ;;  %v806_v53 = vld [vmem:[%s2086_s13 + $0x8] sm:$0x1] }
  0x73   : > { %v2108_v63 = vld.sshfl [vmem:[#allocation1] sm:$0xff pattern:$0x73625140] }
  0x74   : > { %1765 = vmatmul.msk.bf16.vlgmr.msra.gmra.mxu0 %vm636_vm7, %v579_v60  ;;  %v2111_v0 = vld.sshfl [vmem:[#allocation1 + $0x20] sm:$0xff pattern:$0x73625140]  ;;  %702 = vst [vmem:[#allocation1] ss:$4 sm:$0xff] %v538_v61 }
  0x75   : > { %706 = vst [vmem:[#allocation1 + $0x20] ss:$4 sm:$0xff] %v539_v62  ;;  %v809_v60 = vld [vmem:[%s2086_s13 + $0xe] sm:$0x1] }
  0x7b   : > { %v2115_v3 = vld.sshfl [vmem:[#allocation1] sm:$0xff pattern:$0x73625140] }
  0x7c   : > { %v2117_v4 = vld.sshfl [vmem:[#allocation1 + $0x20] sm:$0xff pattern:$0x73625140]  ;;  %710 = vst [vmem:[#allocation1] ss:$4 sm:$0xff] %v540_v1 }
  0x7d   : > { %714 = vst [vmem:[#allocation1 + $0x20] ss:$4 sm:$0xff] %v541_v2  ;;  %v762_v1 = vld [vmem:[%s2064_s12] sm:$0x1]  ;;  %v764_v2 = vld [vmem:[%s2064_s12 + $0x4] sm:$0x1] }
  0x83   : > { %v2121_v7 = vld.sshfl [vmem:[#allocation1] sm:$0xff pattern:$0x73625140] }
  0x84   : > { %v2123_v8 = vld.sshfl [vmem:[#allocation1 + $0x20] sm:$0xff pattern:$0x73625140]  ;;  %842 = vst [vmem:[#allocation1] ss:$4 sm:$0xff] %v794_v5  ;;  %v770_v5 = vunpack.c.l.bf16 %v762_v1 }
  0x85   : > { %847 = vst [vmem:[#allocation1 + $0x20] ss:$4 sm:$0xff] %v795_v6  ;;  %v1058_v6 = vld [vmem:[%s2059_s11] sm:$0x2] }
  0x8b   : > { %v843_v11 = vld.sshfl [vmem:[#allocation1] sm:$0xff pattern:$0x73625140] }
  0x8c   : > { %v848_v12 = vld.sshfl [vmem:[#allocation1 + $0x20] sm:$0xff pattern:$0x73625140]  ;;  %851 = vst [vmem:[#allocation1] ss:$4 sm:$0xff] %v796_v9  ;;  %v874_v14 = vunpack.c.l.b16 %v843_v11  ;;  %v772_v11 = vunpack.c.l.bf16 %v764_v2 }
  0x8d   : > { %855 = vst [vmem:[#allocation1 + $0x20] ss:$4 sm:$0xff] %v797_v10  ;;  %v875_v19 = vunpack.c.l.b16 %v848_v12  ;;  %v763_v9 = vld [vmem:[%s2064_s12 + $0x2] sm:$0x1]  ;;  %v765_v10 = vld [vmem:[%s2064_s12 + $0x6] sm:$0x1] }
  0x8e   : > { %v882_v20 = vrot.slane %v874_v14, 1  ;;  %v1059_v12 = vld [vmem:[%s2059_s11 + $0x2] sm:$0x2]  ;;  %v771_v14 = vunpack.c.l.bf16 %v763_v9 }
  0x90   : > { %v883_v24 = vsel %vm559_vm0, %v875_v19, %v882_v20  ;;  %v780_v20 = vmul.f32 0.35351563, %v772_v11 }
  0x93   : > { %v852_v16 = vld.sshfl [vmem:[#allocation1] sm:$0xff pattern:$0x73625140] }
  0x94   : > { %v856_v17 = vld.sshfl [vmem:[#allocation1 + $0x20] sm:$0xff pattern:$0x73625140]  ;;  %859 = vst [vmem:[#allocation1] ss:$4 sm:$0xff] %v798_v13  ;;  %v876_v18 = vunpack.c.l.b16 %v852_v16  ;;  %v778_v16 = vmul.f32 0.35351563, %v770_v5 }
  0x95   : > { %863 = vst [vmem:[#allocation1 + $0x20] ss:$4 sm:$0xff] %v799_v15  ;;  %v877_v21 = vunpack.c.l.b16 %v856_v17  ;;  %v766_v13 = vld [vmem:[%s2064_s12 + $0x8] sm:$0x1]  ;;  %v773_v15 = vunpack.c.l.bf16 %v765_v10 }
  0x96   : > { %v884_v22 = vrot.slane %v876_v18, 7  ;;  %v767_v18 = vld [vmem:[%s2064_s12 + $0xa] sm:$0x1]  ;;  %v774_v19 = vunpack.c.l.bf16 %v766_v13 }
  0x97   : > { %v886_v27 = vrot.slane %v877_v21, 6 }
  0x98   : > { %v885_v30 = vsel %vm562_vm1, %v884_v22, %v883_v24  ;;  %v775_v22 = vunpack.c.l.bf16 %v767_v18  ;;  %v786_v24 = vpack.c.bf16 %v778_v16, %v778_v16  ;;  %v1063_v18 = vld [vmem:[%s2059_s11 + $0xa] sm:$0x2] }
  0x99   : > { %v887_v33 = vsel %vm565_vm2, %v886_v27, %v885_v30  ;;  %v788_v27 = vpack.c.bf16 %v780_v20, %v780_v20  ;;  %v781_v30 = vmul.f32 0.35351563, %v773_v15  ;;  %v1062_v15 = vld [vmem:[%s2059_s11 + $0x8] sm:$0x2] }
  0x9b   : > { %v860_v26 = vld.sshfl [vmem:[#allocation1] sm:$0xff pattern:$0x73625140] }
  0x9c   : > { %v864_v28 = vld.sshfl [vmem:[#allocation1 + $0x20] sm:$0xff pattern:$0x73625140]  ;;  %867 = vst [vmem:[#allocation1] ss:$4 sm:$0xff] %v800_v23  ;;  %v878_v29 = vunpack.c.l.b16 %v860_v26  ;;  %v779_v23 = vmul.f32 0.35351563, %v771_v14 }
  0x9d   : > { %871 = vst [vmem:[#allocation1 + $0x20] ss:$4 sm:$0xff] %v801_v25  ;;  %v879_v31 = vunpack.c.l.b16 %v864_v28  ;;  %v768_v25 = vld [vmem:[%s2064_s12 + $0xc] sm:$0x1]  ;;  %v769_v26 = vld [vmem:[%s2064_s12 + $0xe] sm:$0x1] }
  0x9e   : > { %v888_v32 = vrot.slane %v878_v29, 5  ;;  %v776_v28 = vunpack.c.l.bf16 %v768_v25  ;;  %v777_v29 = vunpack.c.l.bf16 %v769_v26  ;;  %v1065_v25 = vld [vmem:[%s2059_s11 + $0xe] sm:$0x2] }
  0x9f   : > { %v890_v35 = vrot.slane %v879_v31, 4  ;;  %v782_v31 = vmul.f32 0.35351563, %v774_v19 }
  0xa0   : > { %v889_v37 = vsel %vm568_vm3, %v888_v32, %v887_v33  ;;  %v783_v32 = vmul.f32 0.35351563, %v775_v22  ;;  %v787_v33 = vpack.c.bf16 %v779_v23, %v779_v23 }
  0xa1   : > { %v891_v42 = vsel %vm571_vm4, %v890_v35, %v889_v37  ;;  %v820_v35 = vunpack.c.l.b16 %v788_v27  ;;  %v785_v37 = vmul.f32 0.35351563, %v777_v29 }
  0xa3   : > { %v868_v38 = vld.sshfl [vmem:[#allocation1] sm:$0xff pattern:$0x73625140] }
  0xa4   : > { %v872_v39 = vld.sshfl [vmem:[#allocation1 + $0x20] sm:$0xff pattern:$0x73625140]  ;;  %v880_v40 = vunpack.c.l.b16 %v868_v38  ;;  %945 = vst [vmem:[#allocation1] ss:$4 sm:$0xff] %v802_v34  ;;  %v818_v34 = vunpack.c.l.b16 %v786_v24  ;;  %v789_v38 = vpack.c.bf16 %v781_v30, %v781_v30 }
  0xa5   : > { %v881_v41 = vunpack.c.l.b16 %v872_v39  ;;  %950 = vst [vmem:[#allocation1 + $0x20] ss:$4 sm:$0xff] %v803_v36  ;;  %v784_v36 = vmul.f32 0.35351563, %v776_v28  ;;  %v790_v39 = vpack.c.bf16 %v782_v31, %v782_v31  ;;  %v1064_v24 = vld [vmem:[%s2059_s11 + $0xc] sm:$0x2] }
  0xa6   : > { %v892_v43 = vrot.slane %v880_v40, 3  ;;  %v1060_v40 = vld [vmem:[%s2059_s11 + $0x4] sm:$0x2]  ;;  %v1067_v28 = vld [vmem:[%s2086_s13 + $0x2] sm:$0x2] }
  0xa7   : > { %v894_v44 = vrot.slane %v881_v41, 2  ;;  %v791_v41 = vpack.c.bf16 %v783_v32, %v783_v32 }
  0xa8   : > { %v893_v45 = vsel %vm574_vm5, %v892_v43, %v891_v42  ;;  %v819_v42 = vunpack.c.l.b16 %v787_v33  ;;  %v826_v43 = vrot.slane %v818_v34, 1  ;;  %v1066_v33 = vld [vmem:[%s2086_s13] sm:$0x2] }
  0xa9   : > { %v895_v47 = vsel %vm577_vm6, %v894_v44, %v893_v45  ;;  %v828_v44 = vrot.slane %v820_v35, 7  ;;  %v1061_v45 = vld [vmem:[%s2059_s11 + $0x6] sm:$0x2]  ;;  %v1068_v35 = vld [vmem:[%s2086_s13 + $0x4] sm:$0x2] }
  0xaa   : > { %v896_v49 = vpack.c.b16 %v895_v47, %v895_v47  ;;  %v793_v47 = vpack.c.bf16 %v785_v37, %v785_v37  ;;  %v1069_v37 = vld [vmem:[%s2086_s13 + $0x6] sm:$0x2] }
  0xab   : > { %v2142_v50 = vld.sshfl [vmem:[#allocation1] sm:$0xff pattern:$0x73625140] }
  0xac   : > { %v901_v51 = vsel %vm636_vm7, %v896_v49, 0  ;;  %v2145_v52 = vld.sshfl [vmem:[#allocation1 + $0x20] sm:$0xff pattern:$0x73625140]  ;;  %954 = vst [vmem:[#allocation1] ss:$4 sm:$0xff] %v804_v46  ;;  %v792_v46 = vpack.c.bf16 %v784_v36, %v784_v36  ;;  %v822_v49 = vunpack.c.l.b16 %v790_v39  ;;  %v825_v1 = vunpack.c.l.b16 %v793_v47 }
  0xad   : > { %910 = vmatpush.bf16.xpose.msra.mxu2 %v901_v51  ;;  %958 = vst [vmem:[#allocation1 + $0x20] ss:$4 sm:$0xff] %v805_v48  ;;  %v821_v48 = vunpack.c.l.b16 %v789_v38  ;;  %v1070_v39 = vld [vmem:[%s2086_s13 + $0x8] sm:$0x2]  ;;  %v1322_v47 = vld [vmem:[%s2059_s11] sm:$0x2] }
  0xaf   : > { %v830_v5 = vrot.slane %v821_v48, 6 }
  0xb3   : > { %v2149_v55 = vld.sshfl [vmem:[#allocation1] sm:$0xff pattern:$0x73625140] }
  0xb4   : > { %v2151_v57 = vld.sshfl [vmem:[#allocation1 + $0x20] sm:$0xff pattern:$0x73625140]  ;;  %962 = vst [vmem:[#allocation1] ss:$4 sm:$0xff] %v806_v53  ;;  %v823_v53 = vunpack.c.l.b16 %v791_v41 }
  0xb5   : > { %966 = vst [vmem:[#allocation1 + $0x20] ss:$4 sm:$0xff] %v807_v54  ;;  %v827_v54 = vsel %vm559_vm0, %v819_v42, %v826_v43  ;;  %v1072_v43 = vld [vmem:[%s2086_s13 + $0xc] sm:$0x2] }
  0xb6   : > { %v829_v2 = vsel %vm562_vm1, %v828_v44, %v827_v54  ;;  %v834_v9 = vrot.slane %v823_v53, 4  ;;  %v1073_v44 = vld [vmem:[%s2086_s13 + $0xe] sm:$0x2]  ;;  %v1324_v54 = vld [vmem:[%s2059_s11 + $0x4] sm:$0x2] }
  0xb7   : > { %v831_v10 = vsel %vm565_vm2, %v830_v5, %v829_v2  ;;  %v1326_v5 = vld [vmem:[%s2059_s11 + $0x8] sm:$0x2] }
  0xbb   : > { %v2155_v61 = vld.sshfl [vmem:[#allocation1] sm:$0xff pattern:$0x73625140] }
  0xbc   : > { %v2157_v62 = vld.sshfl [vmem:[#allocation1 + $0x20] sm:$0xff pattern:$0x73625140]  ;;  %970 = vst [vmem:[#allocation1] ss:$4 sm:$0xff] %v808_v59 }
  0xbd   : > { %974 = vst [vmem:[#allocation1 + $0x20] ss:$4 sm:$0xff] %v809_v60  ;;  %v824_v60 = vunpack.c.l.b16 %v792_v46 }
  0xbf   : > { %v836_v11 = vrot.slane %v824_v60, 3  ;;  %v1325_v60 = vld [vmem:[%s2059_s11 + $0x6] sm:$0x2] }
  0xc3   : > { %v2166_v17 = vld.sshfl [vmem:[#allocation1] sm:$0xff pattern:$0x73625140] }
  0xc4   : > { %v2169_v21 = vld.sshfl [vmem:[#allocation1 + $0x20] sm:$0xff pattern:$0x73625140]  ;;  %1106 = vst [vmem:[#allocation1] ss:$4 sm:$0xff] %v1058_v6  ;;  %v832_v6 = vrot.slane %v822_v49, 5 }
  0xc5   : > { %1111 = vst [vmem:[#allocation1 + $0x20] ss:$4 sm:$0xff] %v1059_v12  ;;  %v838_v12 = vrot.slane %v825_v1, 2  ;;  %v1323_v49 = vld [vmem:[%s2059_s11 + $0x2] sm:$0x2] }
  0xc6   : > { %v833_v13 = vsel %vm568_vm3, %v832_v6, %v831_v10  ;;  %v1327_v6 = vld [vmem:[%s2059_s11 + $0xa] sm:$0x2] }
  0xc7   : > { %v835_v14 = vsel %vm571_vm4, %v834_v9, %v833_v13 }
  0xc8   : > { %v837_v16 = vsel %vm574_vm5, %v836_v11, %v835_v14  ;;  %v1328_v11 = vld [vmem:[%s2059_s11 + $0xc] sm:$0x2] }
  0xc9   : > { %v839_v19 = vsel %vm577_vm6, %v838_v12, %v837_v16  ;;  %v1329_v12 = vld [vmem:[%s2059_s11 + $0xe] sm:$0x2]  ;;  %s1575_s11 = sshll.u32 %s2322_s14, 4  ;;  %s1576_s11 = int_to_ptr.vmem [resolvable:$true] %s1575_s11 }
  0xca   : > { %v840_v22 = vpack.c.b16 %v839_v19, %v839_v19  ;;  %v1290_v19 = vld [vmem:[%s2064_s12] sm:$0x2] }
  0xcb   : > { %v2175_v51 = vld.sshfl [vmem:[#allocation1] sm:$0xff pattern:$0x73625140] }
  0xcc   : > { %v2178_v59 = vld.sshfl [vmem:[#allocation1 + $0x20] sm:$0xff pattern:$0x73625140]  ;;  %1115 = vst [vmem:[#allocation1] ss:$4 sm:$0xff] %v1060_v40  ;;  %1767 = vmatmul.msk.bf16.vlgmr.msra.gmra.mxu2 %vm636_vm7, %v840_v22 }
  0xcd   : > { %1119 = vst [vmem:[#allocation1 + $0x20] ss:$4 sm:$0xff] %v1061_v45  ;;  %v1071_v40 = vld [vmem:[%s2086_s13 + $0xa] sm:$0x2]  ;;  %v1291_v22 = vld [vmem:[%s2064_s12 + $0x2] sm:$0x2] }
  0xd3   : > { %v2188_v20 = vld.sshfl [vmem:[#allocation1] sm:$0xff pattern:$0x73625140] }
  0xd4   : > { %v2190_v23 = vld.sshfl [vmem:[#allocation1 + $0x20] sm:$0xff pattern:$0x73625140]  ;;  %1123 = vst [vmem:[#allocation1] ss:$4 sm:$0xff] %v1062_v15 }
  0xd5   : > { %1127 = vst [vmem:[#allocation1 + $0x20] ss:$4 sm:$0xff] %v1063_v18 }
  0xdb   : > { %v2195_v26 = vld.sshfl [vmem:[#allocation1] sm:$0xff pattern:$0x73625140] }
  0xdc   : > { %v2197_v27 = vld.sshfl [vmem:[#allocation1 + $0x20] sm:$0xff pattern:$0x73625140]  ;;  %1131 = vst [vmem:[#allocation1] ss:$4 sm:$0xff] %v1064_v24 }
  0xdd   : > { %1135 = vst [vmem:[#allocation1 + $0x20] ss:$4 sm:$0xff] %v1065_v25 }
  0xe3   : > { %v2207_v34 = vld.sshfl [vmem:[#allocation1] sm:$0xff pattern:$0x73625140] }
  0xe4   : > { %v2200_v29 = vld.sshfl [vmem:[#allocation1 + $0x20] sm:$0xff pattern:$0x73625140]  ;;  %1209 = vst [vmem:[#allocation1] ss:$4 sm:$0xff] %v1066_v33 }
  0xe5   : > { %1214 = vst [vmem:[#allocation1 + $0x20] ss:$4 sm:$0xff] %v1067_v28  ;;  %v1292_v28 = vld [vmem:[%s2064_s12 + $0x4] sm:$0x2] }
  0xeb   : > { %v2210_v36 = vld.sshfl [vmem:[#allocation1] sm:$0xff pattern:$0x73625140] }
  0xec   : > { %v2213_v38 = vld.sshfl [vmem:[#allocation1 + $0x20] sm:$0xff pattern:$0x73625140]  ;;  %1218 = vst [vmem:[#allocation1] ss:$4 sm:$0xff] %v1068_v35  ;;  %v1299_v35 = vunpack.c.l.bf16 %v1291_v22 }
  0xed   : > { %1222 = vst [vmem:[#allocation1 + $0x20] ss:$4 sm:$0xff] %v1069_v37 }
  0xf1   : > { %v2202_v30 = vpop.f32.mrf.mxu0 }
  0xf2   : > { %v656_v31 = vsel %vm636_vm7, %v2202_v30, -inf }
  0xf3   : > { %657 = vmax.xlane.f32.xlu0 %v656_v31  ;;  %v2217_v41 = vld.sshfl [vmem:[#allocation1] sm:$0xff pattern:$0x73625140]  ;;  %v1298_v31 = vunpack.c.l.bf16 %v1290_v19  ;;  %v1307_v19 = vmul.f32 0.35351563, %v1299_v35 }
  0xf4   : > { %v2219_v42 = vld.sshfl [vmem:[#allocation1 + $0x20] sm:$0xff pattern:$0x73625140]  ;;  %1226 = vst [vmem:[#allocation1] ss:$4 sm:$0xff] %v1070_v39 }
  0xf5   : > { %1230 = vst [vmem:[#allocation1 + $0x20] ss:$4 sm:$0xff] %v1071_v40 }
  0xf9   : > { %v654_v32 = vpop.f32.mrf.mxu0 }
  0xfb   : > { %v2223_v45 = vld.sshfl [vmem:[#allocation1] sm:$0xff pattern:$0x73625140] }
  0xfc   : > { %v2225_v46 = vld.sshfl [vmem:[#allocation1 + $0x20] sm:$0xff pattern:$0x73625140]  ;;  %1234 = vst [vmem:[#allocation1] ss:$4 sm:$0xff] %v1072_v43 }
  0xfd   : > { %1238 = vst [vmem:[#allocation1 + $0x20] ss:$4 sm:$0xff] %v1073_v44  ;;  %v1294_v43 = vld [vmem:[%s2064_s12 + $0x8] sm:$0x2]  ;;  %v1306_v44 = vmul.f32 0.35351563, %v1298_v31 }
 0x103   : > { %v2228_v48 = vld.sshfl [vmem:[#allocation1] sm:$0xff pattern:$0x73625140] }
 0x104   : > { %v2231_v53 = vld.sshfl [vmem:[#allocation1 + $0x20] sm:$0xff pattern:$0x73625140]  ;;  %1370 = vst [vmem:[#allocation1] ss:$4 sm:$0xff] %v1322_v47 }
 0x105   : > { %1375 = vst [vmem:[#allocation1 + $0x20] ss:$4 sm:$0xff] %v1323_v49 }
 0x10b   : > { %v1371_v1 = vld.sshfl [vmem:[#allocation1] sm:$0xff pattern:$0x73625140] }
 0x10c   : > { %v1376_v2 = vld.sshfl [vmem:[#allocation1 + $0x20] sm:$0xff pattern:$0x73625140]  ;;  %1379 = vst [vmem:[#allocation1] ss:$4 sm:$0xff] %v1324_v54  ;;  %v1402_v15 = vunpack.c.l.b16 %v1371_v1  ;;  %v1300_v1 = vunpack.c.l.bf16 %v1292_v28 }
 0x10d   : > { %1383 = vst [vmem:[#allocation1 + $0x20] ss:$4 sm:$0xff] %v1325_v60  ;;  %v1403_v16 = vunpack.c.l.b16 %v1376_v2  ;;  %v1293_v60 = vld [vmem:[%s2064_s12 + $0x6] sm:$0x2]  ;;  %v1302_v2 = vunpack.c.l.bf16 %v1294_v43 }
 0x10e   : > { %v1410_v24 = vrot.slane %v1402_v15, 3  ;;  %v1296_v15 = vld [vmem:[%s2064_s12 + $0xc] sm:$0x2] }
 0x10f   : > { %v1411_v25 = vrot.slane %v1403_v16, 2  ;;  %v1297_v16 = vld [vmem:[%s2064_s12 + $0xe] sm:$0x2] }
 0x110   : > { %v1305_v28 = vunpack.c.l.bf16 %v1297_v16 }
 0x111   : > { %v1412_v40 = vsel %vm559_vm0, %v1411_v25, %v1410_v24  ;;  %v1304_v25 = vunpack.c.l.bf16 %v1296_v15 }
 0x113   : > { %v1380_v9 = vld.sshfl [vmem:[#allocation1] sm:$0xff pattern:$0x73625140]  ;;  %v1312_v43 = vmul.f32 0.35351563, %v1304_v25 }
 0x114   : > { %v1384_v10 = vld.sshfl [vmem:[#allocation1 + $0x20] sm:$0xff pattern:$0x73625140]  ;;  %1387 = vst [vmem:[#allocation1] ss:$4 sm:$0xff] %v1326_v5  ;;  %v1404_v18 = vunpack.c.l.b16 %v1380_v9 }
 0x115   : > { %1391 = vst [vmem:[#allocation1 + $0x20] ss:$4 sm:$0xff] %v1327_v6  ;;  %v1405_v37 = vunpack.c.l.b16 %v1384_v10  ;;  %v1295_v10 = vld [vmem:[%s2064_s12 + $0xa] sm:$0x2] }
 0x116   : > { %v1413_v33 = vrot.slane %v1404_v18, 1  ;;  %v1303_v18 = vunpack.c.l.bf16 %v1295_v10  ;;  %v1320_v10 = vpack.c.bf16 %v1312_v43, %v1312_v43 }
 0x118   : > { %v1414_v49 = vsel %vm562_vm1, %v1413_v33, %v1412_v40  ;;  %v1310_v40 = vmul.f32 0.35351563, %v1302_v2 }
 0x119   : > { %v1415_v9 = vsel %vm565_vm2, %v1405_v37, %v1414_v49 }
 0x11b   : > { %v1388_v13 = vld.sshfl [vmem:[#allocation1] sm:$0xff pattern:$0x73625140] }
 0x11c   : > { %v1392_v14 = vld.sshfl [vmem:[#allocation1 + $0x20] sm:$0xff pattern:$0x73625140]  ;;  %1395 = vst [vmem:[#allocation1] ss:$4 sm:$0xff] %v1328_v11  ;;  %v1406_v32 = vunpack.c.l.b16 %v1388_v13 }
 0x11d   : > { %1399 = vst [vmem:[#allocation1 + $0x20] ss:$4 sm:$0xff] %v1329_v12  ;;  %v1407_v39 = vunpack.c.l.b16 %v1392_v14  ;;  %v1301_v12 = vunpack.c.l.bf16 %v1293_v60  ;;  %v1315_v60 = vpack.c.bf16 %v1307_v19, %v1307_v19 }
 0x11e   : > { %v1416_v54 = vrot.slane %v1406_v32, 7  ;;  %v1308_v32 = vmul.f32 0.35351563, %v1300_v1 }
 0x11f   : > { %v1418_v11 = vrot.slane %v1407_v39, 6  ;;  %v1309_v33 = vmul.f32 0.35351563, %v1301_v12  ;;  %v1311_v39 = vmul.f32 0.35351563, %v1303_v18  ;;  %v1347_v1 = vunpack.c.l.b16 %v1315_v60 }
 0x120   : > { %v1417_v14 = vsel %vm568_vm3, %v1416_v54, %v1415_v9  ;;  %v1314_v54 = vpack.c.bf16 %v1306_v44, %v1306_v44  ;;  %v1352_v18 = vunpack.c.l.b16 %v1320_v10 }
 0x121   : > { %v1419_v22 = vsel %vm571_vm4, %v1418_v11, %v1417_v14  ;;  %v1317_v9 = vpack.c.bf16 %v1309_v33, %v1309_v33  ;;  %v1318_v11 = vpack.c.bf16 %v1310_v40, %v1310_v40  ;;  %v1355_v19 = vrot.slane %v1347_v1, 2 }
 0x122   : > { %v1364_v40 = vrot.slane %v1352_v18, 5  ;;  %v718_v1 = vunpack.c.l.b16 %v2103_v58  ;;  %v723_v58 = vunpack.c.l.b16 %v2121_v7 }
 0x123   : > { %v1396_v47 = vld.sshfl [vmem:[#allocation1] sm:$0xff pattern:$0x73625140]  ;;  %v1350_v15 = vunpack.c.l.b16 %v1318_v11 }
 0x124   : > { %v1400_v5 = vld.sshfl [vmem:[#allocation1 + $0x20] sm:$0xff pattern:$0x73625140]  ;;  %v1408_v6 = vunpack.c.l.b16 %v1396_v47  ;;  %v1313_v47 = vmul.f32 0.35351563, %v1305_v28  ;;  %v725_v18 = vrot.slane %v718_v1, 7  ;;  %v1144_v1 = vunpack.c.l.b16 %v2207_v34 }
 0x125   : > { %v1409_v13 = vunpack.c.l.b16 %v1400_v5  ;;  %v1316_v5 = vpack.c.bf16 %v1308_v32, %v1308_v32  ;;  %v1360_v28 = vrot.slane %v1350_v15, 7  ;;  %v717_v15 = vunpack.c.l.b16 %v2100_v56 }
 0x126   : > { %v1420_v24 = vrot.slane %v1408_v6, 5  ;;  %v1319_v6 = vpack.c.bf16 %v1311_v39, %v1311_v39  ;;  %v1321_v14 = vpack.c.bf16 %v1313_v47, %v1313_v47  ;;  %v724_v56 = vunpack.c.l.b16 %v2123_v8 }
 0x127   : > { %v1422_v31 = vrot.slane %v1409_v13, 4  ;;  %v1346_v13 = vunpack.c.l.b16 %v1314_v54  ;;  %v1348_v12 = vunpack.c.l.b16 %v1316_v5 }
 0x128   : > { %v1421_v37 = vsel %vm574_vm5, %v1420_v24, %v1419_v22  ;;  %v1351_v16 = vunpack.c.l.b16 %v1319_v6  ;;  %v1349_v24 = vunpack.c.l.b16 %v1317_v9  ;;  %v1353_v44 = vunpack.c.l.b16 %v1321_v14 }
 0x129   : > { %v1423_v49 = vsel %vm577_vm6, %v1422_v31, %v1421_v37  ;;  %v1354_v22 = vrot.slane %v1346_v13, 3  ;;  %v1357_v25 = vrot.slane %v1348_v12, 1 }
 0x12a   : > { %v1424_v35 = vpack.c.b16 %v1423_v49, %v1423_v49  ;;  %v1362_v32 = vrot.slane %v1351_v16, 6  ;;  %v1366_v39 = vrot.slane %v1353_v44, 4  ;;  %v720_v16 = vunpack.c.l.b16 %v2111_v0 }
 0x12b   : > { %v1356_v31 = vsel %vm559_vm0, %v1355_v19, %v1354_v22  ;;  %v722_v44 = vunpack.c.l.b16 %v2117_v4  ;;  %v726_v19 = vsel %vm559_vm0, %v725_v18, %v717_v15  ;;  %v1026_v15 = vld [vmem:[%s2064_s12] sm:$0x2] }
 0x12c   : > { %v1429_v2 = vsel %vm636_vm7, %v1424_v35, 0  ;;  %v1358_v33 = vsel %vm562_vm1, %v1357_v25, %v1356_v31  ;;  %v729_v25 = vrot.slane %v720_v16, 5 }
 0x12d   : > { %1438 = vmatpush.bf16.xpose.msrb.mxu0 %v1429_v2  ;;  %v1359_v37 = vsel %vm565_vm2, %v1349_v24, %v1358_v33  ;;  %v719_v2 = vunpack.c.l.b16 %v2108_v63  ;;  %v735_v33 = vrot.slane %v723_v58, 2  ;;  %v1028_v58 = vld [vmem:[%s2064_s12 + $0x4] sm:$0x2] }
 0x12e   : > { %v1361_v43 = vsel %vm568_vm3, %v1360_v28, %v1359_v37 }
 0x12f   : > { %v1363_v47 = vsel %vm571_vm4, %v1362_v32, %v1361_v43  ;;  %v727_v24 = vrot.slane %v719_v2, 6  ;;  %v733_v32 = vrot.slane %v722_v44, 3  ;;  %v1145_v2 = vunpack.c.l.b16 %v2200_v29 }
 0x130   : > { %v1365_v49 = vsel %vm574_vm5, %v1364_v40, %v1363_v47  ;;  %v737_v40 = vrot.slane %v724_v56, 1  ;;  %v1138_v47 = vunpack.c.l.b16 %v2175_v51  ;;  %v1034_v29 = vunpack.c.l.bf16 %v1026_v15 }
 0x131   : > { %v1367_v54 = vsel %vm577_vm6, %v1366_v39, %v1365_v49  ;;  %v728_v63 = vsel %vm562_vm1, %v727_v24, %v726_v19  ;;  %v1139_v49 = vunpack.c.l.b16 %v2178_v59  ;;  %v1143_v59 = vunpack.c.l.b16 %v2197_v27 }
 0x132   : > { %v1368_v60 = vpack.c.b16 %v1367_v54, %v1367_v54  ;;  %v730_v0 = vsel %vm565_vm2, %v729_v25, %v728_v63  ;;  %v1042_v63 = vmul.f32 0.35351563, %v1034_v29 }
 0x133   : > { %v1154_v18 = vrot.slane %v1143_v59, 5  ;;  %v1033_v59 = vld [vmem:[%s2064_s12 + $0xe] sm:$0x2] }
 0x134   : > { %1773 = vmatmul.msk.bf16.vlgmr.msrb.gmra.mxu0 %vm636_vm7, %v1368_v60 }
 0x14f   : > { %v912_v5 = vpop.f32.mrf.mxu2 }
 0x150   : > { %v916_v35 = vsel %vm636_vm7, %v912_v5, -inf }
 0x151   : > { %917 = vmax.xlane.f32.xlu1 %v916_v35  ;;  %v1146_v35 = vrot.slane %v1138_v47, 2 }
 0x157   : > { %v914_v9 = vpop.f32.mrf.mxu2 }
 0x158   : > { %v1147_v9 = vrot.slane %v1139_v49, 1 }
 0x166   : > { %v658_v11 = vpop.xlane.xlu0 %657 }
 0x167   : > { %v659_v6 = vsub.f32 %v2202_v30, %v658_v11  ;;  %v721_v30 = vunpack.c.l.b16 %v2115_v3  ;;  %v1140_v11 = vunpack.c.l.b16 %v2188_v20  ;;  %v1027_v20 = vld [vmem:[%s2064_s12 + $0x2] sm:$0x2] }
 0x168   : > { %v1035_v24 = vunpack.c.l.bf16 %v1027_v20  ;;  %v1041_v20 = vunpack.c.l.bf16 %v1033_v59  ;;  %v980_v59 = vunpack.c.l.b16 %v2151_v57 }
 0x169   : > { %v660_v10 = vmul.f32 1.442695, %v659_v6  ;;  %v731_v31 = vrot.slane %v721_v30, 4  ;;  %v1142_v6 = vunpack.c.l.b16 %v2195_v26  ;;  %v1158_v30 = vrot.slane %v1145_v2, 3 }
 0x16b   : > { %1843 = vpow2.f32 %v660_v10  ;;  %v732_v3 = vsel %vm568_vm3, %v731_v31, %v730_v0  ;;  %v1148_v10 = vsel %vm559_vm0, %v1147_v9, %v1146_v35  ;;  %v1043_v31 = vmul.f32 0.35351563, %v1035_v24  ;;  %v1030_v0 = vld [vmem:[%s2064_s12 + $0x8] sm:$0x2] }
 0x16c   : > { %v734_v4 = vsel %vm571_vm4, %v733_v32, %v732_v3 }
 0x16d   : > { %v736_v39 = vsel %vm574_vm5, %v735_v33, %v734_v4  ;;  %v1036_v33 = vunpack.c.l.bf16 %v1028_v58  ;;  %v1050_v4 = vpack.c.bf16 %v1042_v63, %v1042_v63 }
 0x16e   : > { %v738_v43 = vsel %vm577_vm6, %v737_v40, %v736_v39  ;;  %v1051_v40 = vpack.c.bf16 %v1043_v31, %v1043_v31  ;;  %v1031_v39 = vld [vmem:[%s2064_s12 + $0xa] sm:$0x2] }
 0x16f   : > { %v739_v8 = vpack.c.b16 %v738_v43, %v738_v43  ;;  %v1044_v47 = vmul.f32 0.35351563, %v1036_v33  ;;  %v1039_v49 = vunpack.c.l.bf16 %v1031_v39 }
 0x171   : > { %v2265_v14 = vpop.eup %1843  ;;  %v745_v60 = vsel %vm743_vm8, %v739_v8, 0  ;;  %v1032_v8 = vld [vmem:[%s2064_s12 + $0xc] sm:$0x2] }
 0x172   : > { %v662_v13 = vsel %vm636_vm7, %v2265_v14, 0.0  ;;  %754 = vmatpush.bf16.msra.mxu1 %v745_v60  ;;  %v1082_v60 = vunpack.c.l.b16 %v1050_v4 }
 0x173   : > { %663 = vadd.xlane.f32.xlu0 %v662_v13 }
 0x1b1   : > { %v2282_v37 = vpop.f32.mrf.mxu0 }
 0x1b2   : > { %v1444_v7 = vsel %vm636_vm7, %v2282_v37, -inf }
 0x1b3   : > { %1445 = vmax.xlane.f32.xlu2 %v1444_v7  ;;  %v1038_v7 = vunpack.c.l.bf16 %v1030_v0 }
 0x1b5   : > { %v1046_v35 = vmul.f32 0.35351563, %v1038_v7 }
 0x1b9   : > { %v1442_v26 = vpop.f32.mrf.mxu0 }
 0x1c4   : > { %v918_v12 = vpop.xlane.xlu1 %917 }
 0x1c5   : > { %v919_v22 = vsub.f32 %v912_v5, %v918_v12  ;;  %v1141_v5 = vunpack.c.l.b16 %v2190_v23  ;;  %v1149_v23 = vsel %vm562_vm1, %v1140_v11, %v1148_v10  ;;  %v1152_v12 = vrot.slane %v1142_v6, 6 }
 0x1c6   : > { %v1040_v11 = vunpack.c.l.bf16 %v1032_v8  ;;  %v1052_v10 = vpack.c.bf16 %v1044_v47, %v1044_v47 }
 0x1c7   : > { %v920_v28 = vmul.f32 1.442695, %v919_v22  ;;  %v1150_v13 = vrot.slane %v1141_v5, 7  ;;  %v1156_v22 = vrot.slane %v1144_v1, 4  ;;  %v1083_v5 = vunpack.c.l.b16 %v1051_v40 }
 0x1c8   : > { %v1090_v1 = vrot.slane %v1082_v60, 2  ;;  %v1048_v26 = vmul.f32 0.35351563, %v1040_v11 }
 0x1c9   : > { %1845 = vpow2.f32 %v920_v28  ;;  %v1151_v16 = vsel %vm565_vm2, %v1150_v13, %v1149_v23  ;;  %v1029_v28 = vld [vmem:[%s2064_s12 + $0x6] sm:$0x2]  ;;  %v1047_v13 = vmul.f32 0.35351563, %v1039_v49  ;;  %v1091_v2 = vrot.slane %v1083_v5, 1  ;;  %s1577_s12 = sshll.u32 %s1574_s10, 4  ;;  %s1578_s12 = int_to_ptr.hbm [resolvable:$true] %s1577_s12 }
 0x1ca   : > { %v1153_v27 = vsel %vm568_vm3, %v1152_v12, %v1151_v16  ;;  %v1037_v32 = vunpack.c.l.bf16 %v1029_v28  ;;  %v1054_v12 = vpack.c.bf16 %v1046_v35, %v1046_v35  ;;  %v1056_v58 = vpack.c.bf16 %v1048_v26, %v1048_v26  ;;  %s1873_s21 = sshra.s32 %s1578_s12, 4  ;;  %s1874_s21 = int_to_ptr.hbm [resolvable:$true] %s1873_s21 }
 0x1cb   : > { %v1155_v34 = vsel %vm571_vm4, %v1154_v18, %v1153_v27  ;;  %s1875_s22 = scalar_lea.hbm %s1874_s21, 16  ;;  %p1880_p4 = scmp.lt.s32.totalorder %s1874_s21, %s2461_s3 }
 0x1cc   : > { %v1157_v44 = vsel %vm574_vm5, %v1156_v22, %v1155_v34  ;;  %v1045_v43 = vmul.f32 0.35351563, %v1037_v32  ;;  %v1084_v22 = vunpack.c.l.b16 %v1052_v10  ;;  %v1092_v34 = vsel %vm559_vm0, %v1091_v2, %v1090_v1  ;;  %p1876_p1 = scmp.ne.s32.totalorder %s1874_s21, %s1875_s22  ;;  %p1881_p6 = scmp.lt.s32.totalorder %s1879_s18, %s1875_s22 }
 0x1cd   : > { %v1159_v19 = vsel %vm577_vm6, %v1158_v30, %v1157_v44  ;;  %v1055_v30 = vpack.c.bf16 %v1047_v13, %v1047_v13  ;;  %v1086_v24 = vunpack.c.l.b16 %v1054_v12  ;;  %v1088_v40 = vunpack.c.l.b16 %v1056_v58 }
 0x1ce   : > { %v1160_v25 = vpack.c.b16 %v1159_v19, %v1159_v19  ;;  %v1053_v6 = vpack.c.bf16 %v1045_v43, %v1045_v43  ;;  %v1049_v19 = vmul.f32 0.35351563, %v1041_v20  ;;  %v1093_v63 = vsel %vm562_vm1, %v1084_v22, %v1092_v34  ;;  %p1877_p2 = pnand %p1876_p1, %p2012_p5  ;;  %p1882_p7 = por %p1881_p6, %p1880_p4 }
 0x1cf   : > { %v2290_v54 = vpop.eup %1845  ;;  %v1096_v32 = vrot.slane %v1086_v24, 6  ;;  %v1100_v8 = vrot.slane %v1088_v40, 4  ;;  %v981_v10 = vunpack.c.l.b16 %v2155_v61  ;;  %v982_v2 = vunpack.c.l.b16 %v2157_v62 }
 0x1d0   : > { %v922_v51 = vsel %vm636_vm7, %v2290_v54, 0.0  ;;  %v1165_v56 = vsel %vm636_vm7, %v1160_v25, 0  ;;  %v1085_v16 = vunpack.c.l.b16 %v1053_v6  ;;  %v1057_v33 = vpack.c.bf16 %v1049_v19, %v1049_v19  ;;  %p1878_p3 = pneg %p1877_p2 }
 0x1d1   : > { %923 = vadd.xlane.f32.xlu2 %v922_v51  ;;  %1174 = vmatpush.bf16.xpose.msrb.mxu1 %v1165_v56  ;;  %v1087_v56 = vunpack.c.l.b16 %v1055_v30  ;;  %v979_v6 = vunpack.c.l.b16 %v2149_v55  ;;  %v984_v20 = vunpack.c.l.b16 %v2169_v21  ;;  %v993_v26 = vrot.slane %v982_v2, 4 }
 0x1d2   : > { %v1094_v25 = vrot.slane %v1085_v16, 7  ;;  %v1089_v43 = vunpack.c.l.b16 %v1057_v33  ;;  %p1883_p8 = pnand %p1882_p7, %p1878_p3 }
 0x1d3   : > { %v1098_v39 = vrot.slane %v1087_v56, 5  ;;  %v987_v1 = vrot.slane %v979_v6, 7  ;;  %v1337_v6 = vld [vmem:[%s2086_s13 + $0xe] sm:$0x2] }
 0x1d4   : > { %v1102_v47 = vrot.slane %v1089_v43, 3  ;;  %v1331_v43 = vld [vmem:[%s2086_s13 + $0x2] sm:$0x2] }
 0x1d5   : > { %1478 = vst [vmem:[#allocation1 + $0x20] ss:$4 sm:$0xff] %v1331_v43 }
 0x1e6   : > { %v664_v3 = vpop.xlane.xlu0 %663 }
 0x1e7   : > { %1847 = vrcp.f32 %v664_v3  ;;  %v676_v15 = vand.u32 2147483648, %v664_v3  ;;  %v674_v27 = vand.u32 2147483647, %v664_v3  ;;  %vm670_vm10 = vweird.f32 %v664_v3 }
 0x1e9   : > { %v677_v44 = vor.u32 1.1754944e-38, %v676_v15  ;;  %vm675_vm12 = vcmp.eq.f32.partialorder %v674_v27, 8.507059e+37  ;;  %v989_v15 = vrot.slane %v980_v59, 6 }
 0x1ed   : > { %v1848_v9 = vpop.eup %1847 }
 0x1ee   : > { %v666_v51 = vmul.f32 %v1848_v9, %v664_v3  ;;  %vm671_vm9 = vweird.f32 %v1848_v9  ;;  %v1095_v3 = vsel %vm565_vm2, %v1094_v25, %v1093_v63 }
 0x1ef   : > { %vm672_vm11 = vmor %vm670_vm10, %vm671_vm9  ;;  %v1097_v7 = vsel %vm568_vm3, %v1096_v32, %v1095_v3 }
 0x1f0   : > { %v667_v23 = vsub.f32 1.0, %v666_v51  ;;  %v978_v51 = vunpack.c.l.b16 %v2145_v52 }
 0x1f2   : > { %v668_v18 = vmul.f32 %v1848_v9, %v667_v23  ;;  %v983_v23 = vunpack.c.l.b16 %v2166_v17 }
 0x1f4   : > { %v669_v29 = vadd.f32 %v1848_v9, %v668_v18  ;;  %v995_v57 = vrot.slane %v983_v23, 3  ;;  %v997_v18 = vrot.slane %v984_v20, 2 }
 0x1f6   : > { %v673_v28 = vsel %vm672_vm11, %v1848_v9, %v669_v29  ;;  %v977_v9 = vunpack.c.l.b16 %v2142_v50  ;;  %v991_v50 = vrot.slane %v981_v10, 5 }
 0x1f7   : > { %v678_v31 = vsel %vm675_vm12, %v677_v44, %v673_v28 }
 0x1f8   : > { %v680_v0 = vmul.f32 %v2265_v14, %v678_v31  ;;  %v1099_v14 = vsel %vm571_vm4, %v1098_v39, %v1097_v7  ;;  %v985_v13 = vrot.slane %v977_v9, 1 }
 0x1f9   : > { %v1101_v49 = vsel %vm574_vm5, %v1100_v8, %v1099_v14  ;;  %v1332_v8 = vld [vmem:[%s2086_s13 + $0x4] sm:$0x2] }
 0x1fa   : > { %v681_v4 = vpack.c.bf16 %v680_v0, %v680_v0  ;;  %v1103_v60 = vsel %vm577_vm6, %v1102_v47, %v1101_v49  ;;  %v986_v12 = vsel %vm559_vm0, %v978_v51, %v985_v13  ;;  %v1333_v47 = vld [vmem:[%s2086_s13 + $0x6] sm:$0x2]  ;;  %v1479_v49 = vld.sshfl [vmem:[#allocation1 + $0x20] sm:$0xff pattern:$0x73625140] }
 0x1fb   : > { %v1104_v5 = vpack.c.b16 %v1103_v60, %v1103_v60  ;;  %v988_v55 = vsel %vm562_vm1, %v987_v1, %v986_v12  ;;  %1486 = vst [vmem:[#allocation1 + $0x20] ss:$4 sm:$0xff] %v1333_v47  ;;  %v1334_v60 = vld [vmem:[%s2086_s13 + $0x8] sm:$0x2]  ;;  %v1506_v2 = vunpack.c.l.b16 %v1479_v49 }
 0x1fc   : > { %683 = vst.msk [vmem:[%s2322_s14] sm:$0xf] %vm682_vm13, %v681_v4  ;;  %1766 = vmatmul.msk.bf16.vlgmr.msra.gmra.mxu1 %vm636_vm7, %v681_v4  ;;  %v990_v52 = vsel %vm565_vm2, %v989_v15, %v988_v55 }
 0x1fd   : > { %v992_v61 = vsel %vm568_vm3, %v991_v50, %v990_v52  ;;  %v1514_v15 = vrot.slane %v1506_v2, 2 }
 0x1fe   : > { %v994_v62 = vsel %vm571_vm4, %v993_v26, %v992_v61 }
 0x1ff   : > { %v996_v22 = vsel %vm574_vm5, %v995_v57, %v994_v62 }
 0x200   : > { %v998_v21 = vsel %vm577_vm6, %v997_v18, %v996_v22 }
 0x201   : > { %v999_v29 = vpack.c.b16 %v998_v21, %v998_v21 }
 0x202   : > { %v1487_v9 = vld.sshfl [vmem:[#allocation1 + $0x20] sm:$0xff pattern:$0x73625140] }
 0x203   : > { %v1004_v19 = vsel %vm743_vm8, %v999_v29, 0  ;;  %v1508_v55 = vunpack.c.l.b16 %v1487_v9  ;;  %v1244_v9 = vunpack.c.l.b16 %v2219_v42 }
 0x204   : > { %1013 = vmatpush.bf16.msra.mxu3 %v1004_v19 }
 0x20c   : > { %1770 = vmatmul.msk.bf16.vlgmr.msrb.gmra.mxu1 %vm636_vm7, %v1104_v5  ;;  %v1335_v5 = vld [vmem:[%s2086_s13 + $0xa] sm:$0x2] }
 0x20d   : > { %1494 = vst [vmem:[#allocation1 + $0x20] ss:$4 sm:$0xff] %v1335_v5  ;;  %v1241_v5 = vunpack.c.l.b16 %v2210_v36 }
 0x214   : > { %v1495_v59 = vld.sshfl [vmem:[#allocation1 + $0x20] sm:$0xff pattern:$0x73625140] }
 0x215   : > { %1502 = vst [vmem:[#allocation1 + $0x20] ss:$4 sm:$0xff] %v1337_v6  ;;  %v1510_v26 = vunpack.c.l.b16 %v1495_v59  ;;  %v1246_v59 = vunpack.c.l.b16 %v2225_v46 }
 0x21c   : > { %v1503_v18 = vld.sshfl [vmem:[#allocation1 + $0x20] sm:$0xff pattern:$0x73625140] }
 0x226   : > { %v1446_v35 = vpop.xlane.xlu2 %1445 }
 0x244   : > { %v924_v11 = vpop.xlane.xlu2 %923 }
 0x245   : > { %1849 = vrcp.f32 %v924_v11  ;;  %vm930_vm14 = vweird.f32 %v924_v11  ;;  %v936_v17 = vand.u32 2147483648, %v924_v11  ;;  %v934_v34 = vand.u32 2147483647, %v924_v11 }
 0x247   : > { %v937_v44 = vor.u32 1.1754944e-38, %v936_v17  ;;  %vm935_vm10 = vcmp.eq.f32.partialorder %v934_v34, 8.507059e+37  ;;  %v1521_v17 = vrot.slane %v1510_v26, 6 }
 0x24b   : > { %v1850_v16 = vpop.eup %1849 }
 0x24c   : > { %v926_v27 = vmul.f32 %v1850_v16, %v924_v11  ;;  %vm931_vm15 = vweird.f32 %v1850_v16  ;;  %v1336_v11 = vld [vmem:[%s2086_s13 + $0xc] sm:$0x2] }
 0x24d   : > { %vm932_vm9 = vmor %vm930_vm14, %vm931_vm15 }
 0x24e   : > { %v927_v30 = vsub.f32 1.0, %v926_v27 }
 0x250   : > { %v928_v24 = vmul.f32 %v1850_v16, %v927_v30  ;;  %v1512_v30 = vunpack.c.l.b16 %v1503_v18 }
 0x252   : > { %v929_v25 = vadd.f32 %v1850_v16, %v928_v24  ;;  %v1525_v24 = vrot.slane %v1512_v30, 4 }
 0x254   : > { %v933_v28 = vsel %vm932_vm9, %v1850_v16, %v929_v25  ;;  %vm1024_vm9 = vcmask 126016  }
 0x255   : > { %v938_v58 = vsel %vm935_vm10, %v937_v44, %v933_v28 }
 0x256   : > { %v940_v63 = vmul.f32 %v2290_v54, %v938_v58  ;;  %v1447_v54 = vsub.f32 %v2282_v37, %v1446_v35  ;;  %v1330_v37 = vld [vmem:[%s2086_s13] sm:$0x2]  ;;  %s1555_s13 = scalar_lea.sflag [#allocation6], %s431_s25 }
 0x257   : > { %1473 = vst [vmem:[#allocation1] ss:$4 sm:$0xff] %v1330_v37 }
 0x258   : > { %v941_v31 = vpack.c.bf16 %v940_v63, %v940_v63  ;;  %v1448_v33 = vmul.f32 1.442695, %v1447_v54 }
 0x25a   : > { %1768 = vst.msk [vmem:[%s2322_s14 + $0x4] sm:$0xf] %vm682_vm13, %v941_v31  ;;  %1769 = vmatmul.msk.bf16.vlgmr.msra.gmra.mxu3 %vm636_vm7, %v941_v31  ;;  %1851 = vpow2.f32 %v1448_v33 }
 0x25e   : > { %v1474_v14 = vld.sshfl [vmem:[#allocation1] sm:$0xff pattern:$0x73625140] }
 0x25f   : > { %1482 = vst [vmem:[#allocation1] ss:$4 sm:$0xff] %v1332_v8  ;;  %v1505_v1 = vunpack.c.l.b16 %v1474_v14 }
 0x260   : > { %v2366_v40 = vpop.eup %1851 }
 0x261   : > { %v1450_v39 = vsel %vm636_vm7, %v2366_v40, 0.0  ;;  %v1513_v12 = vrot.slane %v1505_v1, 3  ;;  %v1247_v1 = vunpack.c.l.b16 %v2228_v48 }
 0x263   : > { %v1515_v52 = vsel %vm559_vm0, %v1514_v15, %v1513_v12 }
 0x266   : > { %v1483_v35 = vld.sshfl [vmem:[#allocation1] sm:$0xff pattern:$0x73625140] }
 0x267   : > { %1490 = vst [vmem:[#allocation1] ss:$4 sm:$0xff] %v1334_v60  ;;  %v1507_v23 = vunpack.c.l.b16 %v1483_v35  ;;  %v1242_v35 = vunpack.c.l.b16 %v2213_v38  ;;  %v1248_v38 = vunpack.c.l.b16 %v2231_v53 }
 0x269   : > { %v1516_v20 = vrot.slane %v1507_v23, 1  ;;  %v1250_v6 = vrot.slane %v1242_v35, 1  ;;  %v1257_v23 = vrot.slane %v1246_v59, 5  ;;  %v1261_v15 = vrot.slane %v1248_v38, 3 }
 0x26b   : > { %v1517_v16 = vsel %vm562_vm1, %v1516_v20, %v1515_v52 }
 0x26c   : > { %v1518_v62 = vsel %vm565_vm2, %v1508_v55, %v1517_v16 }
 0x26e   : > { %v1491_v51 = vld.sshfl [vmem:[#allocation1] sm:$0xff pattern:$0x73625140] }
 0x26f   : > { %1498 = vst [vmem:[#allocation1] ss:$4 sm:$0xff] %v1336_v11  ;;  %v1509_v50 = vunpack.c.l.b16 %v1491_v51  ;;  %v1249_v11 = vrot.slane %v1241_v5, 2  ;;  %v1243_v51 = vunpack.c.l.b16 %v2217_v41  ;;  %v1259_v41 = vrot.slane %v1247_v1, 4 }
 0x271   : > { %v1519_v61 = vrot.slane %v1509_v50, 7 }
 0x273   : > { %v1520_v21 = vsel %vm568_vm3, %v1519_v61, %v1518_v62 }
 0x274   : > { %v1522_v34 = vsel %vm571_vm4, %v1521_v17, %v1520_v21 }
 0x276   : > { %v1499_v57 = vld.sshfl [vmem:[#allocation1] sm:$0xff pattern:$0x73625140] }
 0x277   : > { %v1511_v27 = vunpack.c.l.b16 %v1499_v57 }
 0x279   : > { %v756_v56 = vpop.f32.mrf.mxu1  ;;  %v1523_v29 = vrot.slane %v1511_v27, 5 }
 0x27a   : > { %v760_v0 = vpack.c.bf16 %v756_v56, %v756_v56 }
 0x27b   : > { %v1524_v44 = vsel %vm574_vm5, %v1523_v29, %v1522_v34 }
 0x27c   : > { %761 = vst.msk [vmem:[%s2357_s30] sm:$0xf] %vm682_vm13, %v760_v0  ;;  %v1526_v19 = vsel %vm577_vm6, %v1525_v24, %v1524_v44 }
 0x27d   : > { %v1527_v25 = vpack.c.b16 %v1526_v19, %v1526_v19 }
 0x27f   : > { %v1532_v28 = vsel %vm743_vm8, %v1527_v25, 0 }
 0x280   : > { %1541 = vmatpush.bf16.msrb.mxu2 %v1532_v28 }
 0x281   : > { %v758_v32 = vpop.f32.mrf.mxu1 }
 0x289   : > { %v2362_v3 = vpop.f32.mrf.mxu1 }
 0x28a   : > { %v1180_v4 = vsel %vm636_vm7, %v2362_v3, -inf }
 0x28b   : > { %1181 = vmax.xlane.f32.xlu1 %v1180_v4 }
 0x291   : > { %v1178_v7 = vpop.f32.mrf.mxu1 }
 0x293   : > { %1451 = vadd.xlane.f32.xlu1 %v1450_v39 }
 0x2dd   : > { %v1015_v10 = vpop.f32.mrf.mxu3 }
 0x2de   : > { %v1019_v13 = vpack.c.bf16 %v1015_v10, %v1015_v10  ;;  %v1251_v10 = vsel %vm559_vm0, %v1250_v6, %v1249_v11 }
 0x2df   : > { %v1252_v2 = vsel %vm562_vm1, %v1243_v51, %v1251_v10 }
 0x2e0   : > { %1021 = vrot.lane.b32.xlu2 %v1019_v13, %s1939_s5  ;;  %v1253_v13 = vrot.slane %v1244_v9, 7 }
 0x2e2   : > { %v1254_v42 = vsel %vm565_vm2, %v1253_v13, %v1252_v2 }
 0x2e5   : > { %v1017_v22 = vpop.f32.mrf.mxu3 }
 0x2fe   : > { %v1182_v58 = vpop.xlane.xlu1 %1181 }
 0x2ff   : > { %v1183_v63 = vsub.f32 %v2362_v3, %v1182_v58 }
 0x301   : > { %v1184_v31 = vmul.f32 1.442695, %v1183_v63 }
 0x303   : > { %1853 = vpow2.f32 %v1184_v31 }
 0x306   : > { %v1452_v56 = vpop.xlane.xlu1 %1451 }
 0x307   : > { %1855 = vrcp.f32 %v1452_v56  ;;  %v1464_v39 = vand.u32 2147483648, %v1452_v56  ;;  %v1462_v37 = vand.u32 2147483647, %v1452_v56  ;;  %vm1458_vm12 = vweird.f32 %v1452_v56 }
 0x309   : > { %v2387_v0 = vpop.eup %1853  ;;  %v1465_v43 = vor.u32 1.1754944e-38, %v1464_v39  ;;  %vm1463_vm15 = vcmp.eq.f32.partialorder %v1462_v37, 8.507059e+37 }
 0x30a   : > { %v1186_v54 = vsel %vm636_vm7, %v2387_v0, 0.0 }
 0x30b   : > { %1187 = vadd.xlane.f32.xlu0 %v1186_v54 }
 0x30d   : > { %v1856_v32 = vpop.eup %1855 }
 0x30e   : > { %v1454_v33 = vmul.f32 %v1856_v32, %v1452_v56  ;;  %vm1459_vm11 = vweird.f32 %v1856_v32 }
 0x30f   : > { %vm1460_vm14 = vmor %vm1458_vm12, %vm1459_vm11 }
 0x310   : > { %v1455_v4 = vsub.f32 1.0, %v1454_v33 }
 0x312   : > { %v1456_v7 = vmul.f32 %v1856_v32, %v1455_v4 }
 0x314   : > { %v1457_v3 = vadd.f32 %v1856_v32, %v1456_v7 }
 0x316   : > { %v1461_v8 = vsel %vm1460_vm14, %v1856_v32, %v1457_v3 }
 0x317   : > { %v1466_v14 = vsel %vm1463_vm15, %v1465_v43, %v1461_v8 }
 0x318   : > { %v1468_v47 = vmul.f32 %v2366_v40, %v1466_v14  ;;  %v1245_v40 = vunpack.c.l.b16 %v2223_v45 }
 0x31a   : > { %v1469_v49 = vpack.c.bf16 %v1468_v47, %v1468_v47  ;;  %v1255_v36 = vrot.slane %v1245_v40, 6 }
 0x31c   : > { %1774 = vst.msk [vmem:[%s2322_s14 + $0xc] sm:$0xf] %vm682_vm13, %v1469_v49  ;;  %1775 = vmatmul.msk.bf16.vlgmr.msrb.gmra.mxu2 %vm636_vm7, %v1469_v49  ;;  %v1256_v12 = vsel %vm568_vm3, %v1255_v36, %v1254_v42 }
 0x31d   : > { %v1258_v45 = vsel %vm571_vm4, %v1257_v23, %v1256_v12 }
 0x31e   : > { %v1260_v46 = vsel %vm574_vm5, %v1259_v41, %v1258_v45 }
 0x31f   : > { %v1262_v50 = vsel %vm577_vm6, %v1261_v15, %v1260_v46 }
 0x320   : > { %v1263_v20 = vpack.c.b16 %v1262_v50, %v1262_v50 }
 0x322   : > { %v1268_v48 = vsel %vm743_vm8, %v1263_v20, 0 }
 0x323   : > { %1277 = vmatpush.bf16.msrb.mxu3 %v1268_v48 }
 0x33a   : > { %v1022_v60 = vpop.permute.xlu2 %1021 }
 0x33b   : > { %1025 = vst.msk [vmem:[%s2357_s30] sm:$0xf] %vm1024_vm9, %v1022_v60 }
 0x37e   : > { %v1188_v55 = vpop.xlane.xlu0 %1187 }
 0x37f   : > { %1857 = vrcp.f32 %v1188_v55  ;;  %v1200_v57 = vand.u32 2147483648, %v1188_v55  ;;  %v1198_v61 = vand.u32 2147483647, %v1188_v55  ;;  %vm1194_vm1 = vweird.f32 %v1188_v55 }
 0x381   : > { %v1201_v27 = vor.u32 1.1754944e-38, %v1200_v57  ;;  %vm1199_vm3 = vcmp.eq.f32.partialorder %v1198_v61, 8.507059e+37 }
 0x385   : > { %v1858_v53 = vpop.eup %1857 }
 0x386   : > { %v1190_v26 = vmul.f32 %v1858_v53, %v1188_v55  ;;  %vm1195_vm0 = vweird.f32 %v1858_v53 }
 0x387   : > { %vm1196_vm2 = vmor %vm1194_vm1, %vm1195_vm0 }
 0x388   : > { %v1191_v52 = vsub.f32 1.0, %v1190_v26 }
 0x38a   : > { %v1192_v16 = vmul.f32 %v1858_v53, %v1191_v52 }
 0x38c   : > { %v1193_v18 = vadd.f32 %v1858_v53, %v1192_v16 }
 0x38e   : > { %v1197_v62 = vsel %vm1196_vm2, %v1858_v53, %v1193_v18 }
 0x38f   : > { %v1202_v17 = vsel %vm1199_vm3, %v1201_v27, %v1197_v62 }
 0x390   : > { %v1204_v22 = vmul.f32 %v2387_v0, %v1202_v17 }
 0x392   : > { %v1205_v30 = vpack.c.bf16 %v1204_v22, %v1204_v22 }
 0x394   : > { %1771 = vst.msk [vmem:[%s2322_s14 + $0x8] sm:$0xf] %vm682_vm13, %v1205_v30  ;;  %1772 = vmatmul.msk.bf16.vlgmr.msrb.gmra.mxu3 %vm636_vm7, %v1205_v30 }
 0x39f   : > { %v1543_v21 = vpop.f32.mrf.mxu2 }
 0x3a0   : > { %v1547_v34 = vpack.c.bf16 %v1543_v21, %v1543_v21 }
 0x3a2   : > { %1549 = vrot.lane.b32.xlu1 %v1547_v34, %s1940_s6 }
 0x3a7   : > { %v1545_v29 = vpop.f32.mrf.mxu2 }
 0x3a8   : > { %1886 = shalt.err (!%p1883_p8)
}
 0x3a9   : > { %s1941_s25 = smov 64   ;;  %s1942_s14 = smov 4   ;;  %vm1288_vm4 = vcmask 191616   ;;  %vm1552_vm5 = vcmask 257216  }
 0x3aa   : > { %1783 = dma.vmem_to_hbm [thread:$0]  (%p2012_p5), %s1576_s11, 256, %s1578_s12, %s1555_s13, %s1941_s25, %s1941_s25, %s1942_s14  }
 0x3ab   : > { %s1943_s7 = smov 16  }
 0x414   : > { %v1550_v28 = vpop.permute.xlu1 %1549 }
 0x417   : > { %v1279_v24 = vpop.f32.mrf.mxu3 }
 0x418   : > { %v1283_v44 = vpack.c.bf16 %v1279_v24, %v1279_v24 }
 0x41a   : > { %1285 = vrot.lane.b32.xlu0 %v1283_v44, %s1943_s7 }
 0x41f   : > { %v1281_v19 = vpop.f32.mrf.mxu3 }
 0x48c   : > { %v1286_v25 = vpop.permute.xlu0 %1285 }
 0x48d   : > { %1289 = vst.msk [vmem:[%s2357_s30] sm:$0xf] %vm1288_vm4, %v1286_v25 }
 0x48e   : > { %1553 = vst.msk [vmem:[%s2357_s30] sm:$0xf] %vm1552_vm5, %v1550_v28 }
 0x48f PF: > { %s1595_s8 = sand.u32 1, %s1917_s15   ;;  %p1786_p11 = pnand %p1736_p10, %p2023_p9 }
 0x490   : > { %s1596_s26 = scalar_lea.sflag [#allocation6], %s1595_s8 }
 0x491   : > { %p1787_p5 = pneg %p1786_p11 }
 0x493   : > { %1912 = dma.done.wait (%p1787_p5), %s1596_s26, 256  }
 0x494   : > { %1914 = vsyncadd (%p1787_p5), %s1596_s26, 4294967040  ;;  %s18_s20 = sadd.s32 1, %s1937_s20   ;;  %s2466_s15 = smov %s1921_s16 }
 0x495   : > { %p15_p12 = scmp.ge.s32.totalorder %s18_s20, 4   ;;  %s2467_s16 = smov %s1925_s17 }
 0x496   : > { %s2468_s17 = smov %s2021_s28  ;;  %s2469_s18 = smov %s1933_s19 }
 0x497   : > { %s2470_s19 = smov %s2472_s23  ;;  %17 = sbr.rel (!%p15_p12) target bundleno = 4 (0x4), region = 234 }
 0x49c   :  { %1612 = vsyncpa [#allocation6], 1 }
 0x49d   :  { %1614 = vsyncpa [#allocation6 + $0x1], 1 }

</bundles_post_ra>
